<compile_context>
chip_gen: v7x
topology: tpu7x:2x2x1
jax: 0.10.0
libtpu: 0.0.40
codegen_flags: <defaults>
</compile_context>

<pallas_src>
import functools

import jax
import jax.numpy as jnp
import numpy as np
from jax.experimental import pallas as pl
from jax.experimental.pallas import tpu as pltpu


def _layernorm_f32(x, gamma, beta, eps=1e-5):
    # Statistics in f32 (matches torch.nn.LayerNorm(dim), eps=1e-5).
    xf = x.astype(jnp.float32)
    g = gamma.astype(jnp.float32)
    b = beta.astype(jnp.float32)
    mean = jnp.mean(xf, axis=-1, keepdims=True)
    var = jnp.mean(jnp.square(xf - mean), axis=-1, keepdims=True)
    return (xf - mean) * jax.lax.rsqrt(var + eps) * g + b


def _perceiver_attn_kernel(x_ref, lat_ref, gm_ref, bm_ref, gl_ref, bl_ref,
                           wq_ref, wk_ref, wv_ref, woh_ref, out_ref,
                           q_s, m_s, l_s, acc_s,
                           *, heads_pg, dim_head, nx_total, tile_x):
    t = pl.program_id(2)
    last_t = pl.num_programs(2) - 1
    cdtype = x_ref.dtype
    needs_mask = (nx_total % tile_x) != 0           # static Python bool

    def project_kv(seg_n):
        # seg_n: (N, D) normalized tokens.  Weights come in pre-transposed as
        # (inner_g, D), so both projections contract the last dims (canonical
        # MXU form) and the result is already (channels, tokens); the head
        # split is a leading-dim reshape -- no per-head lane slices, no stack,
        # no explicit transpose in the hot loop.
        k_t = jnp.einsum('cd,jd->cj', wk_ref[...], seg_n,
                         preferred_element_type=jnp.float32)
        v_t = jnp.einsum('cd,jd->cj', wv_ref[...], seg_n,
                         preferred_element_type=jnp.float32)
        n = seg_n.shape[0]
        k_h = k_t.astype(cdtype).reshape(heads_pg, dim_head, n)    # (H, d, N)
        v_h = v_t.astype(cdtype).reshape(heads_pg, dim_head, n)
        return k_h, v_h

    def merge_segment(k_h, v_h, col_limit=None):
        # Flash-style online-softmax merge of one KV segment (head-batched).
        sim = jnp.einsum('hid,hdj->hij', q_s[...], k_h,
                         preferred_element_type=jnp.float32)        # (H, Nl, N)
        if col_limit is not None:
            col = jax.lax.broadcasted_iota(jnp.int32, sim.shape, 2)
            sim = jnp.where(col < col_limit, sim, jnp.float32(-1e30))
        m_prev = m_s[...]
        m_new = jnp.maximum(m_prev, jnp.max(sim, axis=-1, keepdims=True))
        alpha = jnp.exp(m_prev - m_new)
        p = jnp.exp(sim - m_new)
        l_s[...] = alpha * l_s[...] + jnp.sum(p, axis=-1, keepdims=True)
        acc_s[...] = alpha * acc_s[...] + jnp.einsum(
            'hij,hdj->hid', p.astype(cdtype), v_h,
            preferred_element_type=jnp.float32)
        m_s[...] = m_new

    # ---------------------------------------------------------------- t == 0
    @pl.when(t == 0)
    def _init():
        lat_n = _layernorm_f32(lat_ref[0], gl_ref[...], bl_ref[...]).astype(cdtype)
        # q projection (softmax scale pre-folded into Wq on the host).
        q_flat = jnp.einsum('nd,cd->nc', lat_n, wq_ref[...],
                            preferred_element_type=jnp.float32).astype(cdtype)
        # One-time, tiny (Nl rows) head split of q; negligible cost.
        q_s[...] = jnp.stack(
            [q_flat[:, h * dim_head:(h + 1) * dim_head] for h in range(heads_pg)],
            axis=0)                                                  # (H, Nl, d)
        m_s[...] = jnp.full_like(m_s, -jnp.inf)
        l_s[...] = jnp.zeros_like(l_s)
        acc_s[...] = jnp.zeros_like(acc_s)
        # Latent KV segment: the reference concatenates (x, latents) along the
        # KV axis; softmax is permutation invariant, so merging the two
        # segments separately is mathematically identical.
        k_lat, v_lat = project_kv(lat_n)
        merge_segment(k_lat, v_lat)

    # ------------------------------------------------------ media tile, every t
    x_n = _layernorm_f32(x_ref[0], gm_ref[...], bm_ref[...])
    if needs_mask:
        # Only generated when no mask-free tiling of Nx exists.  Zero padded
        # rows so LN garbage never reaches k/v (0 * NaN would poison p @ v).
        limit = nx_total - t * tile_x
        row = jax.lax.broadcasted_iota(jnp.int32, (tile_x, 1), 0)
        x_n = jnp.where(row < limit, x_n, 0.0)
    k_h, v_h = project_kv(x_n.astype(cdtype))
    merge_segment(k_h, v_h,
                  col_limit=(nx_total - t * tile_x) if needs_mask else None)

    # --------------------------------------------------------------- last tile
    @pl.when(t == last_t)
    def _finalize():
        # Deferred normalisation (one divide per (b, g), epilogue only).
        o = acc_s[...] * pl.reciprocal(l_s[...], approx=False)       # (H, Nl, d)
        out_h = jnp.einsum('hid,hdk->hik', o.astype(cdtype), woh_ref[...],
                           preferred_element_type=jnp.float32)       # (H, Nl, D)
        out_ref[0] = jnp.sum(out_h, axis=0).astype(out_ref.dtype)


def _pick_tile_x(nx, target):
    """Largest multiple of 8 <= target that divides nx (mask-free steady
    state); falls back to `target` with in-kernel masking of the ragged tail."""
    if nx <= target:
        return nx
    target = max(8, (target // 8) * 8)
    for cand in range(target, 7, -8):
        if nx % cand == 0:
            return cand
    return target


def perceiver_attention(x, latents, params, *, heads, dim_head,
                        x_tile=1024, head_groups=1):
    B, Nx, D = x.shape
    _, Nl, _ = latents.shape
    inner = heads * dim_head
    scale = dim_head ** (-0.5)
    dtype = x.dtype
    G = head_groups                        # use 2 on v7x at small batch
    if heads % G != 0:
        raise ValueError("head_groups must divide heads")
    hg = heads // G
    ig = hg * dim_head

    # ---------------- host-side parameter prep (one-time, tiny) -------------
    gm = params["ln_media_gamma"].reshape(1, D)
    bm = params["ln_media_beta"].reshape(1, D)
    gl = params["ln_latents_gamma"].reshape(1, D)
    bl = params["ln_latents_beta"].reshape(1, D)
    # Fold the softmax scale into Wq (note: with bf16 weights this rounds q's
    # scale into the weights -- within normal mixed-precision tolerance).
    wq = (params["wq"].astype(jnp.float32) * scale).astype(params["wq"].dtype)
    wk = params["wkv"][:, :inner]
    wv = params["wkv"][:, inner:]

    def group_t(w):                        # (D, inner) -> (G, inner_g, D)
        return w.reshape(D, G, ig).transpose(1, 2, 0)

    wq_t, wk_t, wv_t = group_t(wq), group_t(wk), group_t(wv)
    woh = params["wo"].reshape(G, hg, dim_head, D)                 # (G, Hg, d, D)

    tile_x = _pick_tile_x(Nx, x_tile)
    n_xt = pl.cdiv(Nx, tile_x)

    kernel = functools.partial(_perceiver_attn_kernel, heads_pg=hg,
                               dim_head=dim_head, nx_total=Nx, tile_x=tile_x)

    # ---------------- VMEM budget + cost estimate ---------------------------
    isz = jnp.dtype(dtype).itemsize
    wsz = jnp.dtype(wq.dtype).itemsize
    blocks = (2 * tile_x * D * isz                  # x tile (double buffered)
              + 2 * Nl * D * isz                    # latents
              + 2 * 3 * ig * D * wsz                # wq/wk/wv (per group)
              + 2 * hg * dim_head * D * wsz         # wo (per group)
              + 2 * Nl * D * 4                      # f32 partial output
              + 2 * 4 * D * 4)                      # LN params
    scratch_b = hg * Nl * dim_head * (isz + 4) + 2 * hg * Nl * 4
    interm = (2 * tile_x * D * 4                    # x_n f32 + cast copy
              + 2 * ig * tile_x * 4                 # k/v tiles
              + 3 * hg * Nl * tile_x * 4)           # sim / p temporaries
    need = blocks + scratch_b + interm
    try:   # generation-aware cap: ~96 MiB on 128-MiB chips, ~48 MiB on v7x
        cap = int(pltpu.get_tpu_info().vmem_capacity_bytes * 3 // 4)
    except Exception:
        cap = 48 * 1024 * 1024
    vmem_limit = int(min(max(2 * need, 32 * 1024 * 1024), cap))

    nkv = Nx + Nl
    flops = 2 * B * (nkv * D * 2 * inner            # k / v projections
                     + Nl * D * inner               # q projection
                     + 2 * heads * Nl * nkv * dim_head  # sim and attn @ v
                     + Nl * inner * D)              # output projection
    bytes_accessed = int((x.size + latents.size) * isz + B * Nl * D * 4
                         + (wq.size + wk.size + wv.size + params["wo"].size) * wsz
                         + 4 * D * 4)

    grid_spec = pltpu.PrefetchScalarGridSpec(
        num_scalar_prefetch=0,
        grid=(B, G, n_xt),
        in_specs=[
            pl.BlockSpec((1, tile_x, D), lambda b, g, t: (b, t, 0)),        # x tile
            pl.BlockSpec((1, Nl, D), lambda b, g, t: (b, 0, 0)),            # latents
            pl.BlockSpec((1, D), lambda b, g, t: (0, 0)),                   # ln_media gamma
            pl.BlockSpec((1, D), lambda b, g, t: (0, 0)),                   # ln_media beta
            pl.BlockSpec((1, D), lambda b, g, t: (0, 0)),                   # ln_latents gamma
            pl.BlockSpec((1, D), lambda b, g, t: (0, 0)),                   # ln_latents beta
            pl.BlockSpec((None, ig, D), lambda b, g, t: (g, 0, 0)),         # Wq^T * scale
            pl.BlockSpec((None, ig, D), lambda b, g, t: (g, 0, 0)),         # Wk^T
            pl.BlockSpec((None, ig, D), lambda b, g, t: (g, 0, 0)),         # Wv^T
            pl.BlockSpec((None, hg, dim_head, D), lambda b, g, t: (g, 0, 0, 0)),  # Wo
        ],
        out_specs=pl.BlockSpec((1, None, Nl, D), lambda b, g, t: (b, g, 0, 0)),
        scratch_shapes=[
            pltpu.VMEM((hg, Nl, dim_head), dtype),          # q (head-split)
            pltpu.VMEM((hg, Nl, 1), jnp.float32),           # running max
            pltpu.VMEM((hg, Nl, 1), jnp.float32),           # running denom
            pltpu.VMEM((hg, Nl, dim_head), jnp.float32),    # running numerator
        ],
    )

    partial_out = pl.pallas_call(
        kernel,
        out_shape=jax.ShapeDtypeStruct((B, G, Nl, D), jnp.float32),
        grid_spec=grid_spec,
        compiler_params=pltpu.CompilerParams(
            dimension_semantics=("parallel", "parallel", "arbitrary"),
            vmem_limit_bytes=vmem_limit),
        cost_estimate=pl.CostEstimate(
            flops=int(flops),
            transcendentals=int(B * heads * Nl * nkv),
            bytes_accessed=bytes_accessed),
    )(x, latents, gm, bm, gl, bl, wq_t, wk_t, wv_t, woh)

    # Per-head-group partials (f32) are summed once in the wrapper (tiny).
    return jnp.sum(partial_out, axis=1).astype(dtype)


def perceiver_attention_ref(x, latents, params, *, heads, dim_head):
    """Pure-JAX reference matching the PyTorch forward exactly."""
    inner = heads * dim_head
    scale = dim_head ** (-0.5)

    def ln(t, g, b):
        mean = jnp.mean(t, axis=-1, keepdims=True)
        var = jnp.mean((t - mean) ** 2, axis=-1, keepdims=True)
        return (t - mean) * jax.lax.rsqrt(var + 1e-5) * g + b

    xn = ln(x, params["ln_media_gamma"], params["ln_media_beta"])
    ln_ = ln(latents, params["ln_latents_gamma"], params["ln_latents_beta"])
    q = ln_ @ params["wq"]
    kv_in = jnp.concatenate([xn, ln_], axis=-2)
    kv = kv_in @ params["wkv"]
    k, v = kv[..., :inner], kv[..., inner:]

    def split_heads(t):
        B, N, _ = t.shape
        return t.reshape(B, N, heads, dim_head).transpose(0, 2, 1, 3)

    q, k, v = map(split_heads, (q, k, v))
    q = q * scale
    sim = jnp.einsum("bhid,bhjd->bhij", q, k)
    sim = sim - jnp.max(sim, axis=-1, keepdims=True)
    attn = jax.nn.softmax(sim, axis=-1)
    out = jnp.einsum("bhij,bhjd->bhid", attn, v)
    B, _, Nl, _ = out.shape
    out = out.transpose(0, 2, 1, 3).reshape(B, Nl, inner)
    return out @ params["wo"]


if __name__ == "__main__":
    B, Nl = 2, 8
    dim, dim_head, heads = 32, 8, 4
    inner = dim_head * heads

    key = jax.random.PRNGKey(0)
    ks = jax.random.split(key, 8)

    latents = jax.random.normal(ks[1], (B, Nl, dim), dtype=jnp.float32)
    params = {
        "ln_media_gamma": 1.0 + 0.1 * jax.random.normal(ks[2], (dim,), jnp.float32),
        "ln_media_beta": 0.1 * jax.random.normal(ks[3], (dim,), jnp.float32),
        "ln_latents_gamma": 1.0 + 0.1 * jax.random.normal(ks[4], (dim,), jnp.float32),
        "ln_latents_beta": 0.1 * jax.random.normal(ks[5], (dim,), jnp.float32),
        "wq": 0.1 * jax.random.normal(ks[6], (dim, inner), jnp.float32),
        "wkv": 0.1 * jax.random.normal(ks[7], (dim, 2 * inner), jnp.float32),
        "wo": 0.1 * jax.random.normal(jax.random.fold_in(key, 99), (inner, dim), jnp.float32),
    }

    def check(nx, x_tile, head_groups):
        x = jax.random.normal(jax.random.fold_in(key, 1000 + nx), (B, nx, dim),
                              dtype=jnp.float32)
        out = perceiver_attention(x, latents, params, heads=heads,
                                  dim_head=dim_head, x_tile=x_tile,
                                  head_groups=head_groups)
        out = jax.block_until_ready(out)
        ref = perceiver_attention_ref(x, latents, params, heads=heads,
                                      dim_head=dim_head)
        np.testing.assert_allclose(np.asarray(out), np.asarray(ref),
                                   rtol=1e-4, atol=1e-4)

    check(16, 1024, 1)   # single tile, mask-free steady state
    check(16, 1024, 2)   # head-group split (v7x dual-TensorCore path)
    check(20, 16, 1)     # multi-tile online softmax with a ragged last tile

    print("KERNEL_OK")
</pallas_src>

<mosaic_0001>
module attributes {stable_mosaic.version = 11 : i64} {
  func.func @_perceiver_attn_kernel(%arg0: i32, %arg1: i32, %arg2: i32, %arg3: memref<1x16x32xf32, #tpu.memory_space<vmem>>, %arg4: memref<1x8x32xf32, #tpu.memory_space<vmem>>, %arg5: memref<1x32xf32, #tpu.memory_space<vmem>>, %arg6: memref<1x32xf32, #tpu.memory_space<vmem>>, %arg7: memref<1x32xf32, #tpu.memory_space<vmem>>, %arg8: memref<1x32xf32, #tpu.memory_space<vmem>>, %arg9: memref<1x32x32xf32, #tpu.memory_space<vmem>>, %arg10: memref<1x32x32xf32, #tpu.memory_space<vmem>>, %arg11: memref<1x32x32xf32, #tpu.memory_space<vmem>>, %arg12: memref<1x4x8x32xf32, #tpu.memory_space<vmem>>, %arg13: memref<1x1x8x32xf32, #tpu.memory_space<vmem>>, %arg14: memref<4x8x8xf32, #tpu.memory_space<vmem>>, %arg15: memref<4x8x1xf32, #tpu.memory_space<vmem>>, %arg16: memref<4x8x1xf32, #tpu.memory_space<vmem>>, %arg17: memref<4x8x8xf32, #tpu.memory_space<vmem>>) attributes {dimension_semantics = [#tpu.dimension_semantics<parallel>, #tpu.dimension_semantics<parallel>, #tpu.dimension_semantics<arbitrary>], iteration_bounds = array<i64: 2, 1, 1>, scalar_prefetch = 0 : i64, scratch_operands = 4 : i64, tpu.core_type = #tpu.core_type<tc>, window_params = [{transform_indices = @transform_0, window_bounds = array<i64: 1, 16, 32>}, {transform_indices = @transform_1, window_bounds = array<i64: 1, 8, 32>}, {pipeline_mode = #tpu.pipeline_mode<synchronous>, transform_indices = @transform_2, window_bounds = array<i64: 1, 32>}, {pipeline_mode = #tpu.pipeline_mode<synchronous>, transform_indices = @transform_3, window_bounds = array<i64: 1, 32>}, {pipeline_mode = #tpu.pipeline_mode<synchronous>, transform_indices = @transform_4, window_bounds = array<i64: 1, 32>}, {pipeline_mode = #tpu.pipeline_mode<synchronous>, transform_indices = @transform_5, window_bounds = array<i64: 1, 32>}, {transform_indices = @transform_6, window_bounds = array<i64: 1, 32, 32>}, {transform_indices = @transform_7, window_bounds = array<i64: 1, 32, 32>}, {transform_indices = @transform_8, window_bounds = array<i64: 1, 32, 32>}, {transform_indices = @transform_9, window_bounds = array<i64: 1, 4, 8, 32>}, {transform_indices = @transform_10, window_bounds = array<i64: 1, 1, 8, 32>}]} {
    %c0_i32 = arith.constant 0 : i32
    %0 = arith.cmpi eq, %arg2, %c0_i32 : i32
    %1 = arith.extui %0 : i1 to i32
    %c0_i32_0 = arith.constant 0 : i32
    %2 = arith.cmpi ne, %1, %c0_i32_0 : i32
    scf.if %2 {
      %c0_46 = arith.constant 0 : index
      %c0_47 = arith.constant 0 : index
      %c0_48 = arith.constant 0 : index
      %64 = vector.load %arg4[%c0_46, %c0_47, %c0_48] : memref<1x8x32xf32, #tpu.memory_space<vmem>>, vector<1x8x32xf32>
      %65 = vector.shape_cast %64 : vector<1x8x32xf32> to vector<8x32xf32>
      %c0_49 = arith.constant 0 : index
      %c0_50 = arith.constant 0 : index
      %66 = vector.load %arg7[%c0_49, %c0_50] : memref<1x32xf32, #tpu.memory_space<vmem>>, vector<1x32xf32>
      %c0_51 = arith.constant 0 : index
      %c0_52 = arith.constant 0 : index
      %67 = vector.load %arg8[%c0_51, %c0_52] : memref<1x32xf32, #tpu.memory_space<vmem>>, vector<1x32xf32>
      %cst_53 = arith.constant dense<0.000000e+00> : vector<8xf32>
      %68 = vector.multi_reduction <add>, %65, %cst_53 [1] : vector<8x32xf32> to vector<8xf32>
      %69 = vector.shape_cast %68 : vector<8xf32> to vector<8x1xf32>
      %cst_54 = arith.constant 3.200000e+01 : f32
      %70 = vector.broadcast %cst_54 : f32 to vector<8x1xf32>
      %71 = arith.divf %69, %70 : vector<8x1xf32>
      %72 = vector.broadcast %71 : vector<8x1xf32> to vector<8x32xf32>
      %73 = arith.subf %65, %72 : vector<8x32xf32>
      %74 = arith.mulf %73, %73 : vector<8x32xf32>
      %cst_55 = arith.constant dense<0.000000e+00> : vector<8xf32>
      %75 = vector.multi_reduction <add>, %74, %cst_55 [1] : vector<8x32xf32> to vector<8xf32>
      %76 = vector.shape_cast %75 : vector<8xf32> to vector<8x1xf32>
      %cst_56 = arith.constant 3.200000e+01 : f32
      %77 = vector.broadcast %cst_56 : f32 to vector<8x1xf32>
      %78 = arith.divf %76, %77 : vector<8x1xf32>
      %79 = vector.broadcast %71 : vector<8x1xf32> to vector<8x32xf32>
      %80 = arith.subf %65, %79 : vector<8x32xf32>
      %cst_57 = arith.constant 9.99999974E-6 : f32
      %81 = vector.broadcast %cst_57 : f32 to vector<8x1xf32>
      %82 = arith.addf %78, %81 : vector<8x1xf32>
      %83 = math.rsqrt %82 : vector<8x1xf32>
      %84 = vector.broadcast %83 : vector<8x1xf32> to vector<8x32xf32>
      %85 = arith.mulf %80, %84 : vector<8x32xf32>
      %86 = vector.broadcast %66 : vector<1x32xf32> to vector<8x32xf32>
      %87 = arith.mulf %85, %86 : vector<8x32xf32>
      %88 = vector.broadcast %67 : vector<1x32xf32> to vector<8x32xf32>
      %89 = arith.addf %87, %88 : vector<8x32xf32>
      %c0_58 = arith.constant 0 : index
      %c0_59 = arith.constant 0 : index
      %c0_60 = arith.constant 0 : index
      %90 = vector.load %arg9[%c0_58, %c0_59, %c0_60] : memref<1x32x32xf32, #tpu.memory_space<vmem>>, vector<1x32x32xf32>
      %91 = vector.shape_cast %90 : vector<1x32x32xf32> to vector<32x32xf32>
      "tpu.trace_start"() <{level = 10 : i32, message = "nd,cd->nc"}> : () -> ()
      %cst_61 = arith.constant dense<0.000000e+00> : vector<8x32xf32>
      %92 = tpu.matmul %89, %91, %cst_61 {dimension_numbers = #tpu.dot_dimension_numbers<[1], [1], [0], [0], [0, 0, 1, 0], [], []>} : vector<8x32xf32>, vector<32x32xf32>, vector<8x32xf32> -> vector<8x32xf32>
      "tpu.trace_stop"() : () -> ()
      %93 = vector.extract_strided_slice %92 {offsets = [0, 0], sizes = [8, 8], strides = [1, 1]} : vector<8x32xf32> to vector<8x8xf32>
      %94 = vector.extract_strided_slice %92 {offsets = [0, 8], sizes = [8, 8], strides = [1, 1]} : vector<8x32xf32> to vector<8x8xf32>
      %95 = vector.extract_strided_slice %92 {offsets = [0, 16], sizes = [8, 8], strides = [1, 1]} : vector<8x32xf32> to vector<8x8xf32>
      %96 = vector.extract_strided_slice %92 {offsets = [0, 24], sizes = [8, 8], strides = [1, 1]} : vector<8x32xf32> to vector<8x8xf32>
      %97 = vector.shape_cast %93 : vector<8x8xf32> to vector<1x8x8xf32>
      %98 = vector.shape_cast %94 : vector<8x8xf32> to vector<1x8x8xf32>
      %99 = vector.shape_cast %95 : vector<8x8xf32> to vector<1x8x8xf32>
      %100 = vector.shape_cast %96 : vector<8x8xf32> to vector<1x8x8xf32>
      %101 = tpu.concatenate %97, %98, %99, %100 in 0 : vector<1x8x8xf32>, vector<1x8x8xf32>, vector<1x8x8xf32>, vector<1x8x8xf32> -> vector<4x8x8xf32>
      %c0_62 = arith.constant 0 : index
      %c0_63 = arith.constant 0 : index
      %c0_64 = arith.constant 0 : index
      %102 = vector.load %arg14[%c0_62, %c0_63, %c0_64] : memref<4x8x8xf32, #tpu.memory_space<vmem>>, vector<4x8x8xf32>
      tpu.vector_store %arg14[%c0_62, %c0_63, %c0_64], %101 {strides = array<i32>} : memref<4x8x8xf32, #tpu.memory_space<vmem>>, vector<4x8x8xf32>,
      %cst_65 = arith.constant 0xFF800000 : f32
      %103 = vector.broadcast %cst_65 : f32 to vector<4x8x1xf32>
      %c0_66 = arith.constant 0 : index
      %c0_67 = arith.constant 0 : index
      %c0_68 = arith.constant 0 : index
      %104 = vector.load %arg15[%c0_66, %c0_67, %c0_68] : memref<4x8x1xf32, #tpu.memory_space<vmem>>, vector<4x8x1xf32>
      tpu.vector_store %arg15[%c0_66, %c0_67, %c0_68], %103 {strides = array<i32>} : memref<4x8x1xf32, #tpu.memory_space<vmem>>, vector<4x8x1xf32>,
      %cst_69 = arith.constant 0.000000e+00 : f32
      %105 = vector.broadcast %cst_69 : f32 to vector<4x8x1xf32>
      %c0_70 = arith.constant 0 : index
      %c0_71 = arith.constant 0 : index
      %c0_72 = arith.constant 0 : index
      %106 = vector.load %arg16[%c0_70, %c0_71, %c0_72] : memref<4x8x1xf32, #tpu.memory_space<vmem>>, vector<4x8x1xf32>
      tpu.vector_store %arg16[%c0_70, %c0_71, %c0_72], %105 {strides = array<i32>} : memref<4x8x1xf32, #tpu.memory_space<vmem>>, vector<4x8x1xf32>,
      %cst_73 = arith.constant 0.000000e+00 : f32
      %107 = vector.broadcast %cst_73 : f32 to vector<4x8x8xf32>
      %c0_74 = arith.constant 0 : index
      %c0_75 = arith.constant 0 : index
      %c0_76 = arith.constant 0 : index
      %108 = vector.load %arg17[%c0_74, %c0_75, %c0_76] : memref<4x8x8xf32, #tpu.memory_space<vmem>>, vector<4x8x8xf32>
      tpu.vector_store %arg17[%c0_74, %c0_75, %c0_76], %107 {strides = array<i32>} : memref<4x8x8xf32, #tpu.memory_space<vmem>>, vector<4x8x8xf32>,
      %c0_77 = arith.constant 0 : index
      %c0_78 = arith.constant 0 : index
      %c0_79 = arith.constant 0 : index
      %109 = vector.load %arg10[%c0_77, %c0_78, %c0_79] : memref<1x32x32xf32, #tpu.memory_space<vmem>>, vector<1x32x32xf32>
      %110 = vector.shape_cast %109 : vector<1x32x32xf32> to vector<32x32xf32>
      "tpu.trace_start"() <{level = 10 : i32, message = "cd,jd->cj"}> : () -> ()
      %cst_80 = arith.constant dense<0.000000e+00> : vector<32x8xf32>
      %111 = tpu.matmul %110, %89, %cst_80 {dimension_numbers = #tpu.dot_dimension_numbers<[1], [1], [0], [0], [0, 0, 1, 0], [], []>} : vector<32x32xf32>, vector<8x32xf32>, vector<32x8xf32> -> vector<32x8xf32>
      "tpu.trace_stop"() : () -> ()
      %c0_81 = arith.constant 0 : index
      %c0_82 = arith.constant 0 : index
      %c0_83 = arith.constant 0 : index
      %112 = vector.load %arg11[%c0_81, %c0_82, %c0_83] : memref<1x32x32xf32, #tpu.memory_space<vmem>>, vector<1x32x32xf32>
      %113 = vector.shape_cast %112 : vector<1x32x32xf32> to vector<32x32xf32>
      "tpu.trace_start"() <{level = 10 : i32, message = "cd,jd->cj"}> : () -> ()
      %cst_84 = arith.constant dense<0.000000e+00> : vector<32x8xf32>
      %114 = tpu.matmul %113, %89, %cst_84 {dimension_numbers = #tpu.dot_dimension_numbers<[1], [1], [0], [0], [0, 0, 1, 0], [], []>} : vector<32x32xf32>, vector<8x32xf32>, vector<32x8xf32> -> vector<32x8xf32>
      "tpu.trace_stop"() : () -> ()
      %115 = vector.shape_cast %111 : vector<32x8xf32> to vector<4x8x8xf32>
      %116 = vector.shape_cast %114 : vector<32x8xf32> to vector<4x8x8xf32>
      %c0_85 = arith.constant 0 : index
      %c0_86 = arith.constant 0 : index
      %c0_87 = arith.constant 0 : index
      %117 = vector.load %arg14[%c0_85, %c0_86, %c0_87] : memref<4x8x8xf32, #tpu.memory_space<vmem>>, vector<4x8x8xf32>
      "tpu.trace_start"() <{level = 10 : i32, message = "hid,hdj->hij"}> : () -> ()
      %cst_88 = arith.constant dense<0.000000e+00> : vector<4x8x8xf32>
      %118 = tpu.matmul %117, %115, %cst_88 {dimension_numbers = #tpu.dot_dimension_numbers<[2], [1], [1], [2], [0, 0, 0, 1, 1, 2], [0], [0]>} : vector<4x8x8xf32>, vector<4x8x8xf32>, vector<4x8x8xf32> -> vector<4x8x8xf32>
      "tpu.trace_stop"() : () -> ()
      %c0_89 = arith.constant 0 : index
      %c0_90 = arith.constant 0 : index
      %c0_91 = arith.constant 0 : index
      %119 = vector.load %arg15[%c0_89, %c0_90, %c0_91] : memref<4x8x1xf32, #tpu.memory_space<vmem>>, vector<4x8x1xf32>
      %cst_92 = arith.constant dense<0xFF800000> : vector<4x8xf32>
      %120 = vector.multi_reduction <maximumf>, %118, %cst_92 [2] : vector<4x8x8xf32> to vector<4x8xf32>
      %121 = vector.shape_cast %120 : vector<4x8xf32> to vector<4x8x1xf32>
      %122 = arith.maximumf %119, %121 : vector<4x8x1xf32>
      %123 = arith.subf %119, %122 : vector<4x8x1xf32>
      %124 = math.exp %123 : vector<4x8x1xf32>
      %125 = vector.broadcast %122 : vector<4x8x1xf32> to vector<4x8x8xf32>
      %126 = arith.subf %118, %125 : vector<4x8x8xf32>
      %127 = math.exp %126 : vector<4x8x8xf32>
      %c0_93 = arith.constant 0 : index
      %c0_94 = arith.constant 0 : index
      %c0_95 = arith.constant 0 : index
      %128 = vector.load %arg16[%c0_93, %c0_94, %c0_95] : memref<4x8x1xf32, #tpu.memory_space<vmem>>, vector<4x8x1xf32>
      %129 = arith.mulf %124, %128 : vector<4x8x1xf32>
      %cst_96 = arith.constant dense<0.000000e+00> : vector<4x8xf32>
      %130 = vector.multi_reduction <add>, %127, %cst_96 [2] : vector<4x8x8xf32> to vector<4x8xf32>
      %131 = vector.shape_cast %130 : vector<4x8xf32> to vector<4x8x1xf32>
      %132 = arith.addf %129, %131 : vector<4x8x1xf32>
      %c0_97 = arith.constant 0 : index
      %c0_98 = arith.constant 0 : index
      %c0_99 = arith.constant 0 : index
      %133 = vector.load %arg16[%c0_97, %c0_98, %c0_99] : memref<4x8x1xf32, #tpu.memory_space<vmem>>, vector<4x8x1xf32>
      tpu.vector_store %arg16[%c0_97, %c0_98, %c0_99], %132 {strides = array<i32>} : memref<4x8x1xf32, #tpu.memory_space<vmem>>, vector<4x8x1xf32>,
      %c0_100 = arith.constant 0 : index
      %c0_101 = arith.constant 0 : index
      %c0_102 = arith.constant 0 : index
      %134 = vector.load %arg17[%c0_100, %c0_101, %c0_102] : memref<4x8x8xf32, #tpu.memory_space<vmem>>, vector<4x8x8xf32>
      %135 = vector.broadcast %124 : vector<4x8x1xf32> to vector<4x8x8xf32>
      %136 = arith.mulf %135, %134 : vector<4x8x8xf32>
      "tpu.trace_start"() <{level = 10 : i32, message = "hij,hdj->hid"}> : () -> ()
      %cst_103 = arith.constant dense<0.000000e+00> : vector<4x8x8xf32>
      %137 = tpu.matmul %127, %116, %cst_103 {dimension_numbers = #tpu.dot_dimension_numbers<[2], [2], [1], [1], [0, 0, 0, 1, 1, 1], [0], [0]>} : vector<4x8x8xf32>, vector<4x8x8xf32>, vector<4x8x8xf32> -> vector<4x8x8xf32>
      "tpu.trace_stop"() : () -> ()
      %138 = arith.addf %136, %137 : vector<4x8x8xf32>
      %c0_104 = arith.constant 0 : index
      %c0_105 = arith.constant 0 : index
      %c0_106 = arith.constant 0 : index
      %139 = vector.load %arg17[%c0_104, %c0_105, %c0_106] : memref<4x8x8xf32, #tpu.memory_space<vmem>>, vector<4x8x8xf32>
      tpu.vector_store %arg17[%c0_104, %c0_105, %c0_106], %138 {strides = array<i32>} : memref<4x8x8xf32, #tpu.memory_space<vmem>>, vector<4x8x8xf32>,
      %c0_107 = arith.constant 0 : index
      %c0_108 = arith.constant 0 : index
      %c0_109 = arith.constant 0 : index
      %140 = vector.load %arg15[%c0_107, %c0_108, %c0_109] : memref<4x8x1xf32, #tpu.memory_space<vmem>>, vector<4x8x1xf32>
      tpu.vector_store %arg15[%c0_107, %c0_108, %c0_109], %122 {strides = array<i32>} : memref<4x8x1xf32, #tpu.memory_space<vmem>>, vector<4x8x1xf32>,
    } else {
    }
    %c0 = arith.constant 0 : index
    %c0_1 = arith.constant 0 : index
    %c0_2 = arith.constant 0 : index
    %3 = vector.load %arg3[%c0, %c0_1, %c0_2] : memref<1x16x32xf32, #tpu.memory_space<vmem>>, vector<1x16x32xf32>
    %4 = vector.shape_cast %3 : vector<1x16x32xf32> to vector<16x32xf32>
    %c0_3 = arith.constant 0 : index
    %c0_4 = arith.constant 0 : index
    %5 = vector.load %arg5[%c0_3, %c0_4] : memref<1x32xf32, #tpu.memory_space<vmem>>, vector<1x32xf32>
    %c0_5 = arith.constant 0 : index
    %c0_6 = arith.constant 0 : index
    %6 = vector.load %arg6[%c0_5, %c0_6] : memref<1x32xf32, #tpu.memory_space<vmem>>, vector<1x32xf32>
    %cst = arith.constant dense<0.000000e+00> : vector<16xf32>
    %7 = vector.multi_reduction <add>, %4, %cst [1] : vector<16x32xf32> to vector<16xf32>
    %8 = vector.shape_cast %7 : vector<16xf32> to vector<16x1xf32>
    %cst_7 = arith.constant 3.200000e+01 : f32
    %9 = vector.broadcast %cst_7 : f32 to vector<16x1xf32>
    %10 = arith.divf %8, %9 : vector<16x1xf32>
    %11 = vector.broadcast %10 : vector<16x1xf32> to vector<16x32xf32>
    %12 = arith.subf %4, %11 : vector<16x32xf32>
    %13 = arith.mulf %12, %12 : vector<16x32xf32>
    %cst_8 = arith.constant dense<0.000000e+00> : vector<16xf32>
    %14 = vector.multi_reduction <add>, %13, %cst_8 [1] : vector<16x32xf32> to vector<16xf32>
    %15 = vector.shape_cast %14 : vector<16xf32> to vector<16x1xf32>
    %cst_9 = arith.constant 3.200000e+01 : f32
    %16 = vector.broadcast %cst_9 : f32 to vector<16x1xf32>
    %17 = arith.divf %15, %16 : vector<16x1xf32>
    %18 = vector.broadcast %10 : vector<16x1xf32> to vector<16x32xf32>
    %19 = arith.subf %4, %18 : vector<16x32xf32>
    %cst_10 = arith.constant 9.99999974E-6 : f32
    %20 = vector.broadcast %cst_10 : f32 to vector<16x1xf32>
    %21 = arith.addf %17, %20 : vector<16x1xf32>
    %22 = math.rsqrt %21 : vector<16x1xf32>
    %23 = vector.broadcast %22 : vector<16x1xf32> to vector<16x32xf32>
    %24 = arith.mulf %19, %23 : vector<16x32xf32>
    %25 = vector.broadcast %5 : vector<1x32xf32> to vector<16x32xf32>
    %26 = arith.mulf %24, %25 : vector<16x32xf32>
    %27 = vector.broadcast %6 : vector<1x32xf32> to vector<16x32xf32>
    %28 = arith.addf %26, %27 : vector<16x32xf32>
    %c0_11 = arith.constant 0 : index
    %c0_12 = arith.constant 0 : index
    %c0_13 = arith.constant 0 : index
    %29 = vector.load %arg10[%c0_11, %c0_12, %c0_13] : memref<1x32x32xf32, #tpu.memory_space<vmem>>, vector<1x32x32xf32>
    %30 = vector.shape_cast %29 : vector<1x32x32xf32> to vector<32x32xf32>
    "tpu.trace_start"() <{level = 10 : i32, message = "cd,jd->cj"}> : () -> ()
    %cst_14 = arith.constant dense<0.000000e+00> : vector<32x16xf32>
    %31 = tpu.matmul %30, %28, %cst_14 {dimension_numbers = #tpu.dot_dimension_numbers<[1], [1], [0], [0], [0, 0, 1, 0], [], []>} : vector<32x32xf32>, vector<16x32xf32>, vector<32x16xf32> -> vector<32x16xf32>
    "tpu.trace_stop"() : () -> ()
    %c0_15 = arith.constant 0 : index
    %c0_16 = arith.constant 0 : index
    %c0_17 = arith.constant 0 : index
    %32 = vector.load %arg11[%c0_15, %c0_16, %c0_17] : memref<1x32x32xf32, #tpu.memory_space<vmem>>, vector<1x32x32xf32>
    %33 = vector.shape_cast %32 : vector<1x32x32xf32> to vector<32x32xf32>
    "tpu.trace_start"() <{level = 10 : i32, message = "cd,jd->cj"}> : () -> ()
    %cst_18 = arith.constant dense<0.000000e+00> : vector<32x16xf32>
    %34 = tpu.matmul %33, %28, %cst_18 {dimension_numbers = #tpu.dot_dimension_numbers<[1], [1], [0], [0], [0, 0, 1, 0], [], []>} : vector<32x32xf32>, vector<16x32xf32>, vector<32x16xf32> -> vector<32x16xf32>
    "tpu.trace_stop"() : () -> ()
    %35 = vector.shape_cast %31 : vector<32x16xf32> to vector<4x8x16xf32>
    %36 = vector.shape_cast %34 : vector<32x16xf32> to vector<4x8x16xf32>
    %c0_19 = arith.constant 0 : index
    %c0_20 = arith.constant 0 : index
    %c0_21 = arith.constant 0 : index
    %37 = vector.load %arg14[%c0_19, %c0_20, %c0_21] : memref<4x8x8xf32, #tpu.memory_space<vmem>>, vector<4x8x8xf32>
    "tpu.trace_start"() <{level = 10 : i32, message = "hid,hdj->hij"}> : () -> ()
    %cst_22 = arith.constant dense<0.000000e+00> : vector<4x8x16xf32>
    %38 = tpu.matmul %37, %35, %cst_22 {dimension_numbers = #tpu.dot_dimension_numbers<[2], [1], [1], [2], [0, 0, 0, 1, 1, 2], [0], [0]>} : vector<4x8x8xf32>, vector<4x8x16xf32>, vector<4x8x16xf32> -> vector<4x8x16xf32>
    "tpu.trace_stop"() : () -> ()
    %c0_23 = arith.constant 0 : index
    %c0_24 = arith.constant 0 : index
    %c0_25 = arith.constant 0 : index
    %39 = vector.load %arg15[%c0_23, %c0_24, %c0_25] : memref<4x8x1xf32, #tpu.memory_space<vmem>>, vector<4x8x1xf32>
    %cst_26 = arith.constant dense<0xFF800000> : vector<4x8xf32>
    %40 = vector.multi_reduction <maximumf>, %38, %cst_26 [2] : vector<4x8x16xf32> to vector<4x8xf32>
    %41 = vector.shape_cast %40 : vector<4x8xf32> to vector<4x8x1xf32>
    %42 = arith.maximumf %39, %41 : vector<4x8x1xf32>
    %43 = arith.subf %39, %42 : vector<4x8x1xf32>
    %44 = math.exp %43 : vector<4x8x1xf32>
    %45 = vector.broadcast %42 : vector<4x8x1xf32> to vector<4x8x16xf32>
    %46 = arith.subf %38, %45 : vector<4x8x16xf32>
    %47 = math.exp %46 : vector<4x8x16xf32>
    %c0_27 = arith.constant 0 : index
    %c0_28 = arith.constant 0 : index
    %c0_29 = arith.constant 0 : index
    %48 = vector.load %arg16[%c0_27, %c0_28, %c0_29] : memref<4x8x1xf32, #tpu.memory_space<vmem>>, vector<4x8x1xf32>
    %49 = arith.mulf %44, %48 : vector<4x8x1xf32>
    %cst_30 = arith.constant dense<0.000000e+00> : vector<4x8xf32>
    %50 = vector.multi_reduction <add>, %47, %cst_30 [2] : vector<4x8x16xf32> to vector<4x8xf32>
    %51 = vector.shape_cast %50 : vector<4x8xf32> to vector<4x8x1xf32>
    %52 = arith.addf %49, %51 : vector<4x8x1xf32>
    %c0_31 = arith.constant 0 : index
    %c0_32 = arith.constant 0 : index
    %c0_33 = arith.constant 0 : index
    %53 = vector.load %arg16[%c0_31, %c0_32, %c0_33] : memref<4x8x1xf32, #tpu.memory_space<vmem>>, vector<4x8x1xf32>
    tpu.vector_store %arg16[%c0_31, %c0_32, %c0_33], %52 {strides = array<i32>} : memref<4x8x1xf32, #tpu.memory_space<vmem>>, vector<4x8x1xf32>,
    %c0_34 = arith.constant 0 : index
    %c0_35 = arith.constant 0 : index
    %c0_36 = arith.constant 0 : index
    %54 = vector.load %arg17[%c0_34, %c0_35, %c0_36] : memref<4x8x8xf32, #tpu.memory_space<vmem>>, vector<4x8x8xf32>
    %55 = vector.broadcast %44 : vector<4x8x1xf32> to vector<4x8x8xf32>
    %56 = arith.mulf %55, %54 : vector<4x8x8xf32>
    "tpu.trace_start"() <{level = 10 : i32, message = "hij,hdj->hid"}> : () -> ()
    %cst_37 = arith.constant dense<0.000000e+00> : vector<4x8x8xf32>
    %57 = tpu.matmul %47, %36, %cst_37 {dimension_numbers = #tpu.dot_dimension_numbers<[2], [2], [1], [1], [0, 0, 0, 1, 1, 1], [0], [0]>} : vector<4x8x16xf32>, vector<4x8x16xf32>, vector<4x8x8xf32> -> vector<4x8x8xf32>
    "tpu.trace_stop"() : () -> ()
    %58 = arith.addf %56, %57 : vector<4x8x8xf32>
    %c0_38 = arith.constant 0 : index
    %c0_39 = arith.constant 0 : index
    %c0_40 = arith.constant 0 : index
    %59 = vector.load %arg17[%c0_38, %c0_39, %c0_40] : memref<4x8x8xf32, #tpu.memory_space<vmem>>, vector<4x8x8xf32>
    tpu.vector_store %arg17[%c0_38, %c0_39, %c0_40], %58 {strides = array<i32>} : memref<4x8x8xf32, #tpu.memory_space<vmem>>, vector<4x8x8xf32>,
    %c0_41 = arith.constant 0 : index
    %c0_42 = arith.constant 0 : index
    %c0_43 = arith.constant 0 : index
    %60 = vector.load %arg15[%c0_41, %c0_42, %c0_43] : memref<4x8x1xf32, #tpu.memory_space<vmem>>, vector<4x8x1xf32>
    tpu.vector_store %arg15[%c0_41, %c0_42, %c0_43], %42 {strides = array<i32>} : memref<4x8x1xf32, #tpu.memory_space<vmem>>, vector<4x8x1xf32>,
    %c0_i32_44 = arith.constant 0 : i32
    %61 = arith.cmpi eq, %arg2, %c0_i32_44 : i32
    %62 = arith.extui %61 : i1 to i32
    %c0_i32_45 = arith.constant 0 : i32
    %63 = arith.cmpi ne, %62, %c0_i32_45 : i32
    scf.if %63 {
      %c0_46 = arith.constant 0 : index
      %c0_47 = arith.constant 0 : index
      %c0_48 = arith.constant 0 : index
      %64 = vector.load %arg17[%c0_46, %c0_47, %c0_48] : memref<4x8x8xf32, #tpu.memory_space<vmem>>, vector<4x8x8xf32>
      %c0_49 = arith.constant 0 : index
      %c0_50 = arith.constant 0 : index
      %c0_51 = arith.constant 0 : index
      %65 = vector.load %arg16[%c0_49, %c0_50, %c0_51] : memref<4x8x1xf32, #tpu.memory_space<vmem>>, vector<4x8x1xf32>
      %66 = tpu.reciprocal %65 : vector<4x8x1xf32> -> vector<4x8x1xf32>
      %67 = vector.broadcast %66 : vector<4x8x1xf32> to vector<4x8x8xf32>
      %68 = arith.mulf %64, %67 : vector<4x8x8xf32>
      %c0_52 = arith.constant 0 : index
      %c0_53 = arith.constant 0 : index
      %c0_54 = arith.constant 0 : index
      %c0_55 = arith.constant 0 : index
      %69 = vector.load %arg12[%c0_52, %c0_53, %c0_54, %c0_55] : memref<1x4x8x32xf32, #tpu.memory_space<vmem>>, vector<1x4x8x32xf32>
      %70 = vector.shape_cast %69 : vector<1x4x8x32xf32> to vector<4x8x32xf32>
      "tpu.trace_start"() <{level = 10 : i32, message = "hid,hdk->hik"}> : () -> ()
      %cst_56 = arith.constant dense<0.000000e+00> : vector<4x8x32xf32>
      %71 = tpu.matmul %68, %70, %cst_56 {dimension_numbers = #tpu.dot_dimension_numbers<[2], [1], [1], [2], [0, 0, 0, 1, 1, 2], [0], [0]>} : vector<4x8x8xf32>, vector<4x8x32xf32>, vector<4x8x32xf32> -> vector<4x8x32xf32>
      "tpu.trace_stop"() : () -> ()
      %cst_57 = arith.constant dense<0.000000e+00> : vector<8x32xf32>
      %72 = vector.multi_reduction <add>, %71, %cst_57 [0] : vector<4x8x32xf32> to vector<8x32xf32>
      %c0_58 = arith.constant 0 : index
      %c0_59 = arith.constant 0 : index
      %c0_60 = arith.constant 0 : index
      %c0_61 = arith.constant 0 : index
      %73 = vector.load %arg13[%c0_58, %c0_59, %c0_60, %c0_61] : memref<1x1x8x32xf32, #tpu.memory_space<vmem>>, vector<1x1x8x32xf32>
      %74 = vector.shape_cast %73 : vector<1x1x8x32xf32> to vector<8x32xf32>
      %75 = vector.shape_cast %72 : vector<8x32xf32> to vector<1x1x8x32xf32>
      tpu.vector_store %arg13[%c0_58, %c0_59, %c0_60, %c0_61], %75 {strides = array<i32>} : memref<1x1x8x32xf32, #tpu.memory_space<vmem>>, vector<1x1x8x32xf32>,
    } else {
    }
    return
  }
  func.func @transform_0(%arg0: i32, %arg1: i32, %arg2: i32) -> (i32, i32, i32) {
    %c0_i32 = arith.constant 0 : i32
    %c0_i32_0 = arith.constant 0 : i32
    return %arg0, %arg2, %c0_i32 : i32, i32, i32
  }
  func.func @transform_1(%arg0: i32, %arg1: i32, %arg2: i32) -> (i32, i32, i32) {
    %c0_i32 = arith.constant 0 : i32
    %c0_i32_0 = arith.constant 0 : i32
    %c0_i32_1 = arith.constant 0 : i32
    return %arg0, %c0_i32, %c0_i32_0 : i32, i32, i32
  }
  func.func @transform_2(%arg0: i32, %arg1: i32, %arg2: i32) -> (i32, i32) {
    %c0_i32 = arith.constant 0 : i32
    %c0_i32_0 = arith.constant 0 : i32
    %c0_i32_1 = arith.constant 0 : i32
    return %c0_i32, %c0_i32_0 : i32, i32
  }
  func.func @transform_3(%arg0: i32, %arg1: i32, %arg2: i32) -> (i32, i32) {
    %c0_i32 = arith.constant 0 : i32
    %c0_i32_0 = arith.constant 0 : i32
    %c0_i32_1 = arith.constant 0 : i32
    return %c0_i32, %c0_i32_0 : i32, i32
  }
  func.func @transform_4(%arg0: i32, %arg1: i32, %arg2: i32) -> (i32, i32) {
    %c0_i32 = arith.constant 0 : i32
    %c0_i32_0 = arith.constant 0 : i32
    %c0_i32_1 = arith.constant 0 : i32
    return %c0_i32, %c0_i32_0 : i32, i32
  }
  func.func @transform_5(%arg0: i32, %arg1: i32, %arg2: i32) -> (i32, i32) {
    %c0_i32 = arith.constant 0 : i32
    %c0_i32_0 = arith.constant 0 : i32
    %c0_i32_1 = arith.constant 0 : i32
    return %c0_i32, %c0_i32_0 : i32, i32
  }
  func.func @transform_6(%arg0: i32, %arg1: i32, %arg2: i32) -> (i32, i32, i32) {
    %c0_i32 = arith.constant 0 : i32
    %c0_i32_0 = arith.constant 0 : i32
    %c0_i32_1 = arith.constant 0 : i32
    return %arg1, %c0_i32, %c0_i32_0 : i32, i32, i32
  }
  func.func @transform_7(%arg0: i32, %arg1: i32, %arg2: i32) -> (i32, i32, i32) {
    %c0_i32 = arith.constant 0 : i32
    %c0_i32_0 = arith.constant 0 : i32
    %c0_i32_1 = arith.constant 0 : i32
    return %arg1, %c0_i32, %c0_i32_0 : i32, i32, i32
  }
  func.func @transform_8(%arg0: i32, %arg1: i32, %arg2: i32) -> (i32, i32, i32) {
    %c0_i32 = arith.constant 0 : i32
    %c0_i32_0 = arith.constant 0 : i32
    %c0_i32_1 = arith.constant 0 : i32
    return %arg1, %c0_i32, %c0_i32_0 : i32, i32, i32
  }
  func.func @transform_9(%arg0: i32, %arg1: i32, %arg2: i32) -> (i32, i32, i32, i32) {
    %c0_i32 = arith.constant 0 : i32
    %c0_i32_0 = arith.constant 0 : i32
    %c0_i32_1 = arith.constant 0 : i32
    %c0_i32_2 = arith.constant 0 : i32
    return %arg1, %c0_i32, %c0_i32_0, %c0_i32_1 : i32, i32, i32, i32
  }
  func.func @transform_10(%arg0: i32, %arg1: i32, %arg2: i32) -> (i32, i32, i32, i32) {
    %c0_i32 = arith.constant 0 : i32
    %c0_i32_0 = arith.constant 0 : i32
    %c0_i32_1 = arith.constant 0 : i32
    return %arg0, %arg1, %c0_i32, %c0_i32_0 : i32, i32, i32, i32
  }
}

</mosaic_0001>

<bundles_post_ra>
// kernel: tpu_custom_call.1
= control target key start
LH: loop header
LB: loop body
LE: loop exit
PB: predicated region body
PF: predicated region fallthrough
CT: control target
= control target key end

     0   :  { %s4824_s0 = inlined_call_operand.hbm [shape: f32[2,16,32], index: 0, kind: input, shape index: {}]   ;;  %s4825_s1 = inlined_call_operand.hbm [shape: f32[2,8,32], index: 1, kind: input, shape index: {}]   ;;  %s4826_s2 = inlined_call_operand.vmem [shape: f32[1,32], index: 2, kind: input, shape index: {}]   ;;  %s4827_s3 = inlined_call_operand.vmem [shape: f32[1,32], index: 3, kind: input, shape index: {}]   ;;  %s4828_s4 = inlined_call_operand.hbm [shape: f32[1,32], index: 4, kind: input, shape index: {}]   ;;  %s4829_s5 = inlined_call_operand.hbm [shape: f32[1,32], index: 5, kind: input, shape index: {}]   ;;  %s4830_s6 = inlined_call_operand.hbm [shape: f32[1,32,32], index: 6, kind: input, shape index: {}]   ;;  %s4831_s7 = inlined_call_operand.hbm [shape: f32[1,32,32], index: 7, kind: input, shape index: {}]   ;;  %s4832_s8 = inlined_call_operand.hbm [shape: f32[1,32,32], index: 8, kind: input, shape index: {}]   ;;  %s4833_s9 = inlined_call_operand.vmem [shape: f32[1,4,8,32], index: 9, kind: input, shape index: {}]   ;;  %s4834_s10 = inlined_call_operand.hbm [shape: f32[2,1,8,32], index: 10, kind: output, shape index: {}]  }
   0x1   :  { %4843 = sst [smem:[#allocation26_spill]] %s4824_s0 }
   0x2   :  { %4844 = sst [smem:[#allocation27_spill]] %s4827_s3 }
   0x3   :  { %4845 = sst [smem:[#allocation28_spill]] %s4828_s4 }
   0x4   :  { %4846 = sst [smem:[#allocation29_spill]] %s4829_s5 }
   0x5   :  { %4847 = sst [smem:[#allocation30_spill]] %s4830_s6 }
   0x6   :  { %4848 = sst [smem:[#allocation31_spill]] %s4831_s7 }
   0x7   :  { %4849 = sst [smem:[#allocation32_spill]] %s4832_s8 }
   0x8   :  { %4850 = sst [smem:[#allocation33_spill]] %s4833_s9 }
   0x9   :  { %4851 = sst [smem:[#allocation34_spill]] %s4834_s10 }
   0xa   :  { %15 = vsyncpa [#allocation7], 0 }
   0xb   :  { %17 = vsyncpa [#allocation7 + $0x1], 0 }
   0xc   :  { %18 = vsyncpa [#allocation10], 0 }
   0xd   :  { %20 = vsyncpa [#allocation10 + $0x1], 0 }
   0xe   :  { %21 = vsyncpa [#allocation13], 0 }
   0xf   :  { %22 = vsyncpa [#allocation16], 0 }
  0x10   :  { %23 = vsyncpa [#allocation8], 0 }
  0x11   :  { %25 = vsyncpa [#allocation8 + $0x1], 0  ;;  %s4036_s13 = smov 0   ;;  %s4038_s14 = smov 0  }
  0x12   :  { %s4040_s15 = smov 0   ;;  %s4042_s16 = smov 0  }
  0x13   :  { %s4044_s17 = smov 0   ;;  %s4046_s18 = smov 0  }
  0x14 LB: > { %4852 = sst [smem:[#allocation25_spill]] %s3953_s16  ;;  %s4067_s19 = sadd.s32 4294967295, %s3961_s18   ;;  %s3961_s18 = sphi %s4046_s18, %s31_s18   ;;  %s3957_s17 = sphi %s4044_s17, %s4892_s17   ;;  %s3953_s16 = sphi %s4042_s16, %s4891_s16   ;;  %s3949_s15 = sphi %s4040_s15, %s4890_s15   ;;  %s3945_s14 = sphi %s4038_s14, %s4889_s14   ;;  %s3941_s13 = sphi %s4036_s13, %s4888_s13  }
  0x15   : > { %p3167_p0 = scmp.ge.s32.totalorder %s3961_s18, 1  ;;  %p4835_p1 = scmp.eq.s32.totalorder %s4067_s19, 0 }
  0x16   : > { %p325_p2 = scmp.lt.s32.totalorder %s3961_s18, 3  ;;  %s3963_s21 = smov [#allocation11]  }
  0x17   : > { %s344_s22 = sshll.u32 %s3963_s21, 4  ;;  %s3964_s23 = smov [#allocation12]   ;;  %s345_s22 = int_to_ptr.vmem [resolvable:$true] %s344_s22 }
  0x18   : > { %p4072_p3 = pnand %p3167_p0, %p325_p2  ;;  %s355_s24 = sshll.u32 %s3964_s23, 4  ;;  %s4085_s24 = int_to_ptr.vmem [resolvable:$true] %s355_s24 }
  0x19   : > { %s3965_s26 = smov [#allocation15]   ;;  %s4855_s4 = sld [smem:[#allocation28_spill]] }
  0x1a   : > { %s4853_s20 = scalar_select %p4072_p3, 1, 0 }
  0x1b   : > { %p3513_p5 = pneg %p4072_p3  ;;  %s4087_s27 = sshll.u32 %s3965_s26, 4  ;;  %s385_s27 = int_to_ptr.vmem [resolvable:$true] %s4087_s27 }
  0x1d   : > { %p4081_p6 = pnand %p3513_p5, %p4835_p1 }
  0x1f   : > { %s3663_s30 = scalar_lea.hbm %s4855_s4, 16  ;;  %p4097_p8 = pneg %p4081_p6 }
  0x20   : > { %p3664_p7 = scmp.ne.s32.totalorder %s4855_s4, %s3663_s30  ;;  %p3670_p11 = scmp.lt.u32.totalorder %s3663_s30, %s4855_s4 }
  0x22   : > { %p3666_p9 = pnand %p4097_p8, %p3664_p7 }
  0x24   : > { %p3667_p10 = pneg %p3666_p9 }
  0x26   : > { %p3672_p12 = pnand %p3670_p11, %p3667_p10 }
  0x28   : > { %3675 = shalt.err (!%p3672_p12)
}
  0x29   : > { %s3676_s28 = scalar_lea.vmem %s345_s22, 16  ;;  %s3683_s29 = scalar_lea.vmem %s345_s22, 32 }
  0x2a   : > { %p3677_p13 = scmp.ne.s32.totalorder %s345_s22, %s3676_s28  ;;  %p3684_p5 = scmp.lt.s32.totalorder %s345_s22, %s345_s22 }
  0x2b   : > { %p3685_p4 = scmp.lt.s32.totalorder %s3683_s29, %s3676_s28 }
  0x2c   : > { %p3679_p0 = pnand %p3677_p13, %p4097_p8 }
  0x2d   : > { %p3686_p1 = por %p3685_p4, %p3684_p5 }
  0x2e   : > { %p3680_p2 = pneg %p3679_p0 }
  0x30   : > { %p3687_p3 = pnand %p3686_p1, %p3680_p2 }
  0x32   : > { %3690 = shalt.err (!%p3687_p3)
}
  0x33   : > { %3516 = dma.hbm_to_vmem [thread:$0]  (!%p4081_p6), %s4855_s4, 16, %s345_s22, [#allocation10]  }
  0x34   : > { %s4857_s5 = sld [smem:[#allocation29_spill]] }
  0x3a   : > { %s3691_s26 = scalar_lea.hbm %s4857_s5, 16 }
  0x3b   : > { %p3692_p7 = scmp.ne.s32.totalorder %s4857_s5, %s3691_s26  ;;  %p3698_p1 = scmp.lt.u32.totalorder %s3691_s26, %s4857_s5 }
  0x3d   : > { %p3694_p9 = pnand %p3692_p7, %p4097_p8 }
  0x3f   : > { %p3695_p4 = pneg %p3694_p9 }
  0x41   : > { %p3700_p3 = pnand %p3698_p1, %p3695_p4 }
  0x43   : > { %3703 = shalt.err (!%p3700_p3)
}
  0x44   : > { %s3704_s22 = scalar_lea.vmem %s4085_s24, 16  ;;  %s3711_s10 = scalar_lea.vmem %s4085_s24, 32 }
  0x45   : > { %p3705_p10 = scmp.ne.s32.totalorder %s4085_s24, %s3704_s22  ;;  %p3712_p13 = scmp.lt.s32.totalorder %s4085_s24, %s4085_s24 }
  0x46   : > { %p3713_p0 = scmp.lt.s32.totalorder %s3711_s10, %s3704_s22 }
  0x47   : > { %p3707_p11 = pnand %p3705_p10, %p4097_p8 }
  0x48   : > { %p3714_p2 = por %p3713_p0, %p3712_p13 }
  0x49   : > { %p3708_p12 = pneg %p3707_p11 }
  0x4b   : > { %p3715_p5 = pnand %p3714_p2, %p3708_p12 }
  0x4d   : > { %3718 = shalt.err (!%p3715_p5)
}
  0x4e   : > { %3519 = dma.hbm_to_vmem [thread:$0]  (!%p4081_p6), %s4857_s5, 16, %s4085_s24, [#allocation13]  }
  0x4f   : > { %s4858_s7 = sld [smem:[#allocation31_spill]] }
  0x55   : > { %s3719_s23 = scalar_lea.hbm %s4858_s7, 512 }
  0x56   : > { %p3720_p7 = scmp.ne.s32.totalorder %s4858_s7, %s3719_s23  ;;  %p3726_p1 = scmp.lt.u32.totalorder %s3719_s23, %s4858_s7 }
  0x58   : > { %p3722_p9 = pnand %p3720_p7, %p4097_p8 }
  0x5a   : > { %p3723_p4 = pneg %p3722_p9 }
  0x5c   : > { %p3728_p3 = pnand %p3726_p1, %p3723_p4 }
  0x5e   : > { %3731 = shalt.err (!%p3728_p3)
}
  0x5f   : > { %s3732_s10 = scalar_lea.vmem %s385_s27, 512  ;;  %p3740_p13 = scmp.lt.s32.totalorder %s385_s27, %s385_s27 }
  0x60   : > { %p3733_p10 = scmp.ne.s32.totalorder %s385_s27, %s3732_s10  ;;  %p3741_p0 = scmp.lt.s32.totalorder %s3732_s10, %s3732_s10 }
  0x62   : > { %p3735_p11 = pnand %p3733_p10, %p4097_p8  ;;  %p3742_p2 = por %p3741_p0, %p3740_p13 }
  0x64   : > { %p3736_p12 = pneg %p3735_p11 }
  0x66   : > { %p3743_p5 = pnand %p3742_p2, %p3736_p12 }
  0x68   : > { %3746 = shalt.err (!%p3743_p5)
}
  0x69   : > { %s4839_s24 = smov 128   ;;  %s4840_s16 = smov 8  }
  0x6a   : > { %3525 = dma.hbm_to_vmem [thread:$0]  (!%p4081_p6), %s4858_s7, 512, %s385_s27, [#allocation16], %s4839_s24, %s4839_s24, %s4840_s16  }
  0x6b   : > { %s3968_s30 = smov [#allocation14]   ;;  %s3969_s26 = smov [#allocation17]  }
  0x6c   : > { %s368_s23 = sshll.u32 %s3968_s30, 4  ;;  %s400_s28 = sshll.u32 %s3969_s26, 4  ;;  %s369_s23 = int_to_ptr.vmem [resolvable:$true] %s368_s23  ;;  %s401_s28 = int_to_ptr.vmem [resolvable:$true] %s400_s28 }
  0x6d   : > { %s4859_s6 = sld [smem:[#allocation30_spill]] }
  0x73   : > { %s3747_s10 = scalar_lea.hbm %s4859_s6, 512 }
  0x74   : > { %p3748_p7 = scmp.ne.s32.totalorder %s4859_s6, %s3747_s10  ;;  %p3754_p1 = scmp.lt.u32.totalorder %s3747_s10, %s4859_s6 }
  0x76   : > { %p3750_p9 = pnand %p3748_p7, %p4097_p8 }
  0x78   : > { %p3751_p4 = pneg %p3750_p9 }
  0x7a   : > { %p3756_p3 = pnand %p3754_p1, %p3751_p4 }
  0x7c   : > { %3759 = shalt.err (!%p3756_p3)
}
  0x7d   : > { %s3760_s27 = scalar_lea.vmem %s369_s23, 512  ;;  %p3768_p13 = scmp.lt.s32.totalorder %s369_s23, %s369_s23 }
  0x7e   : > { %p3761_p10 = scmp.ne.s32.totalorder %s369_s23, %s3760_s27  ;;  %p3769_p0 = scmp.lt.s32.totalorder %s3760_s27, %s3760_s27 }
  0x80   : > { %p3763_p11 = pnand %p3761_p10, %p4097_p8  ;;  %p3770_p2 = por %p3769_p0, %p3768_p13 }
  0x82   : > { %p3764_p12 = pneg %p3763_p11 }
  0x84   : > { %p3771_p5 = pnand %p3770_p2, %p3764_p12 }
  0x86   : > { %3774 = shalt.err (!%p3771_p5)
}
  0x87   : > { %3522 = dma.hbm_to_vmem [thread:$0]  (!%p4081_p6), %s4859_s6, 512, %s369_s23, [#allocation13], %s4839_s24, %s4839_s24, %s4840_s16  }
  0x88   : > { %s4860_s8 = sld [smem:[#allocation32_spill]] }
  0x8e   : > { %s3775_s11 = scalar_lea.hbm %s4860_s8, 512 }
  0x8f   : > { %p3776_p7 = scmp.ne.s32.totalorder %s4860_s8, %s3775_s11  ;;  %p3782_p1 = scmp.lt.u32.totalorder %s3775_s11, %s4860_s8 }
  0x91   : > { %p3778_p9 = pnand %p3776_p7, %p4097_p8 }
  0x93   : > { %p3779_p4 = pneg %p3778_p9 }
  0x95   : > { %p3784_p3 = pnand %p3782_p1, %p3779_p4 }
  0x97   : > { %3787 = shalt.err (!%p3784_p3)
}
  0x98   : > { %s3788_s22 = scalar_lea.vmem %s401_s28, 512  ;;  %p3796_p13 = scmp.lt.s32.totalorder %s401_s28, %s401_s28 }
  0x99   : > { %p3789_p10 = scmp.ne.s32.totalorder %s401_s28, %s3788_s22  ;;  %p3797_p0 = scmp.lt.s32.totalorder %s3788_s22, %s3788_s22 }
  0x9b   : > { %p3791_p11 = pnand %p3789_p10, %p4097_p8  ;;  %p3798_p2 = por %p3797_p0, %p3796_p13 }
  0x9d   : > { %p3792_p12 = pneg %p3791_p11 }
  0x9f   : > { %p3799_p5 = pnand %p3798_p2, %p3792_p12 }
  0xa1   : > { %3802 = shalt.err (!%p3799_p5)
}
  0xa2   : > { %3528 = dma.hbm_to_vmem [thread:$0]  (!%p4081_p6), %s4860_s8, 512, %s401_s28, [#allocation16], %s4839_s24, %s4839_s24, %s4840_s16  }
  0xa3   : > { %s3166_s25 = sadd.s32 4294967294, %s3961_s18   ;;  %s50_s21 = sadd.s32 1, %s3957_s17 }
  0xa4   : > { %s59_s27 = sadd.s32 1, %s3949_s15  ;;  %p52_p8 = scmp.ge.s32.totalorder %s50_s21, 2 }
  0xa5   : > { %p66_p7 = scmp.ne.s32.totalorder %s3949_s15, %s3945_s14  ;;  %p67_p9 = scmp.eq.s32.totalorder %s3961_s18, 0 }
  0xa6   : > { %p72_p4 = scmp.ne.s32.totalorder %s3945_s14, %s3941_s13  ;;  %s4894_s21 = smov (%p52_p8, %s50_s21), 0 }
  0xa7   : > { %p4211_p1 = por %p67_p9, %p66_p7  ;;  %p4862_p3 = scmp.eq.s32.totalorder %s4067_s19, 0 }
  0xa8   : > { %s54_s4 = ssub.s32 %s3957_s17, %s4894_s21  ;;  %p312_p10 = scmp.eq.s32.totalorder %s4067_s19, 1 }
  0xa9   : > { %p4217_p6 = por %p4862_p3, %p72_p4  ;;  %p57_p11 = scmp.eq.s32.totalorder %s54_s4, 0 }
  0xaa   : > { %p318_p12 = scmp.eq.s32.totalorder %s3166_s25, 1  ;;  %p4224_p13 = por %p312_p10, %p66_p7 }
  0xab   : > { %s4863_s28 = scalar_select %p4217_p6, 1, 0 }
  0xac   : > { %s4864_s5 = scalar_select %p4224_p13, 1, 0 }
  0xad   : > { %p3545_p0 = scmp.lt.s32.totalorder %s3961_s18, 2  ;;  %p4232_p2 = por %p318_p12, %p72_p4 }
  0xae   : > { %s4230_s9 = scalar_select %p57_p11, %s3949_s15, %s59_s27  }
  0xaf   : > { %s4865_s11 = scalar_select %p4232_p2, 1, 0 }
  0xb0   : > { %s4237_s12 = sand.u32 1, %s3949_s15   ;;  %s3252_s26 = sshll.u32 %s3957_s17, 8 }
  0xb1   : > { %s3175_s30 = sshll.u32 %s4237_s12, 4  ;;  %s4866_s0 = sld [smem:[#allocation26_spill]] }
  0xb2   : > { %s426_s10 = scalar_lea.vmem [#allocation6], %s3175_s30  ;;  %p4250_p5 = pnand %p3545_p0, %p4211_p1 }
  0xb3   : > { %s435_s25 = sshll.u32 %s426_s10, 4  ;;  %s3178_s24 = sshll.u32 %s4237_s12, 3  ;;  %s4246_s25 = int_to_ptr.vmem [resolvable:$true] %s435_s25 }
  0xb4   : > { %s423_s29 = scalar_lea.sflag [#allocation7], %s4237_s12  ;;  %p3805_p7 = pneg %p4250_p5 }
  0xb7   : > { %s4244_s23 = scalar_lea.hbm %s4866_s0, %s3252_s26  ;;  %s3808_s3 = scalar_lea.hbm %s4866_s0, 512 }
  0xb8   : > { %s3803_s26 = scalar_lea.hbm %s4244_s23, 256  ;;  %p3809_p1 = scmp.lt.u32.totalorder %s4244_s23, %s4866_s0 }
  0xb9   : > { %p3804_p8 = scmp.ne.s32.totalorder %s4244_s23, %s3803_s26  ;;  %p3810_p3 = scmp.lt.u32.totalorder %s3808_s3, %s3803_s26 }
  0xba   : > { %p3812_p11 = scmp.lt.u32.totalorder %s3803_s26, %s4244_s23 }
  0xbb   : > { %p3806_p9 = pnand %p3805_p7, %p3804_p8  ;;  %p3811_p10 = por %p3810_p3, %p3809_p1 }
  0xbd   : > { %p3807_p4 = pneg %p3806_p9  ;;  %p3813_p12 = por %p3812_p11, %p3811_p10 }
  0xbf   : > { %p3814_p0 = pnand %p3813_p12, %p3807_p4 }
  0xc1   : > { %3817 = shalt.err (!%p3814_p0)
}
  0xc2   : > { %s3818_s4 = scalar_lea.vmem %s4246_s25, 256  ;;  %s3970_s30 = smov [#allocation6]  }
  0xc3   : > { %p3819_p8 = scmp.ne.s32.totalorder %s4246_s25, %s3818_s4  ;;  %s3823_s22 = sshll.u32 %s3970_s30, 4  ;;  %s3824_s22 = int_to_ptr.vmem [resolvable:$false] %s3823_s22 }
  0xc4   : > { %s3825_s16 = scalar_lea.vmem %s3824_s22, 512  ;;  %p3826_p13 = scmp.lt.s32.totalorder %s4246_s25, %s3824_s22 }
  0xc5   : > { %p3821_p9 = pnand %p3819_p8, %p3805_p7  ;;  %p3827_p1 = scmp.lt.s32.totalorder %s3825_s16, %s3818_s4 }
  0xc7   : > { %p3822_p2 = pneg %p3821_p9  ;;  %p3828_p3 = por %p3827_p1, %p3826_p13 }
  0xc9   : > { %p3829_p10 = pnand %p3828_p3, %p3822_p2 }
  0xcb   : > { %3832 = shalt.err (!%p3829_p10)
}
  0xcc   : > { %s4868_s26 = smov 8   ;;  %s4869_s3 = smov 128  }
  0xcd   : > { %3532 = dma.hbm_to_vmem [thread:$0]  (!%p4250_p5), %s4244_s23, 256, %s4246_s25, %s423_s29, %s4869_s3, %s4869_s3, %s4868_s26  }
  0xce   : > { %s3179_s10 = sshll.u32 %s3957_s17, 7  ;;  %s449_s16 = scalar_lea.vmem [#allocation9], %s3178_s24 }
  0xcf   : > { %s4291_s22 = scalar_lea.hbm %s4825_s1, %s3179_s10  ;;  %s456_s0 = sshll.u32 %s449_s16, 4  ;;  %s457_s0 = int_to_ptr.vmem [resolvable:$true] %s456_s0 }
  0xd0   : > { %s4870_s6 = sand.u32 1, %s3961_s18   ;;  %s3833_s8 = scalar_lea.hbm %s4291_s22, 128 }
  0xd1   : > { %s446_s7 = scalar_lea.sflag [#allocation10], %s4870_s6  ;;  %p3834_p13 = scmp.ne.s32.totalorder %s4291_s22, %s3833_s8 }
  0xd2   : > { %s3838_s29 = scalar_lea.hbm %s4825_s1, 256  ;;  %p3839_p11 = scmp.lt.u32.totalorder %s4291_s22, %s4825_s1 }
  0xd3   : > { %p3836_p2 = pnand %p3834_p13, %p3805_p7  ;;  %p3840_p12 = scmp.lt.u32.totalorder %s3838_s29, %s3833_s8 }
  0xd4   : > { %p3842_p8 = scmp.lt.u32.totalorder %s3833_s8, %s4291_s22 }
  0xd5   : > { %p3837_p4 = pneg %p3836_p2  ;;  %p3841_p0 = por %p3840_p12, %p3839_p11 }
  0xd7   : > { %p3843_p9 = por %p3842_p8, %p3841_p0 }
  0xd9   : > { %p3844_p1 = pnand %p3843_p9, %p3837_p4 }
  0xdb   : > { %3847 = shalt.err (!%p3844_p1)
}
  0xdc   : > { %s3848_s6 = scalar_lea.vmem %s457_s0, 128  ;;  %s3971_s24 = smov [#allocation9]  }
  0xdd   : > { %p3849_p3 = scmp.ne.s32.totalorder %s457_s0, %s3848_s6  ;;  %s3853_s3 = sshll.u32 %s3971_s24, 4  ;;  %s3854_s3 = int_to_ptr.vmem [resolvable:$false] %s3853_s3 }
  0xde   : > { %s3855_s10 = scalar_lea.vmem %s3854_s3, 256  ;;  %p3856_p2 = scmp.lt.s32.totalorder %s457_s0, %s3854_s3 }
  0xdf   : > { %p3851_p10 = pnand %p3849_p3, %p3805_p7  ;;  %p3857_p6 = scmp.lt.s32.totalorder %s3855_s10, %s3848_s6 }
  0xe1   : > { %p3852_p13 = pneg %p3851_p10  ;;  %p3858_p11 = por %p3857_p6, %p3856_p2 }
  0xe3   : > { %p3859_p12 = pnand %p3858_p11, %p3852_p13 }
  0xe5   : > { %3862 = shalt.err (!%p3859_p12)
}
  0xe6   : > { %3535 = dma.hbm_to_vmem [thread:$0]  (!%p4250_p5), %s4291_s22, 128, %s457_s0, %s446_s7  }
  0xe7   : > { %p4871_p4 = scmp.ne.s32.totalorder %s4853_s20, 0 }
  0xe8   : > { %s4319_s8 = sand.u32 (!%p4871_p4), 1, %s3945_s14   ;;  %p4872_p6 = scmp.ne.s32.totalorder (!%p4871_p4), %s4863_s28, 0 }
  0xe9   : > { %465 = sbr.rel (%p4871_p4) target bundleno = 2656 (0xa60), region = 60  ;;  %s3181_s30 = sshll.u32 (!%p4871_p4), %s4319_s8, 4 }
  0xea   : > { %s468_s4 = scalar_lea.sflag (!%p4871_p4), [#allocation7], %s4319_s8  ;;  %s4323_s16 = scalar_lea.vmem (!%p4871_p4), [#allocation6], %s3181_s30 }
  0xf0   : > { %3916 = dma.done.wait (%p4872_p6), %s468_s4, 256  }
  0xf1   : > { %3918 = vsyncadd (%p4872_p6), %s468_s4, 4294967040  ;;  %s476_s0 = sand.u32 1, %s4067_s19   ;;  %s3182_s7 = sshll.u32 %s4319_s8, 3 }
  0xf2   : > { %s477_s20 = scalar_lea.sflag [#allocation10], %s476_s0  ;;  %s480_s27 = scalar_lea.vmem [#allocation9], %s3182_s7 }
  0xf3   : > { %3920 = dma.done.wait (%p4872_p6), %s477_s20, 128  }
  0xf4   : > { %3922 = vsyncadd (%p4872_p6), %s477_s20, 4294967168  ;;  %p4873_p5 = scmp.eq.s32.totalorder %s4067_s19, 0 }
  0xf6   : > { %3924 = dma.done.wait (%p4873_p5), [#allocation10], 16   ;;  %p4874_p7 = pmov %p4873_p5 }
  0xf7   : > { %p4875_p0 = pmov %p4873_p5 }
  0xf8   : > { %3926 = vsyncadd (%p4874_p7), [#allocation10], 4294967280 }
  0xf9   : > { %3928 = dma.done.wait (%p4875_p0), [#allocation13], 528   ;;  %p4876_p8 = pmov %p4875_p0 }
  0xfa   : > { %p4877_p9 = pmov %p4875_p0 }
  0xfb   : > { %3930 = vsyncadd (%p4876_p8), [#allocation13], 4294966768 }
  0xfc   : > { %3932 = dma.done.wait (%p4877_p9), [#allocation16], 1024   ;;  %p4878_p1 = pmov %p4875_p0 }
  0xfd   : > { %vm560_vm0 = vcmask 261120   ;;  %v557_v0 = vld [vmem:[%s480_s27] sm:$0xff]  ;;  %v589_v7 = vld [vmem:[#allocation14] sm:$0xff]  ;;  %v3972_v10 = vmov 0.0|0.0   ;;  %vm3973_vm2 = vmmov 0   ;;  %v3974_v15 = vmov 0.0  }
  0xfe   : > { %3934 = vsyncadd (%p4878_p1), [#allocation16], 4294966272  ;;  %v561_v1 = vsel %vm560_vm0, %v557_v0, 0.0  ;;  %v590_v8 = vld [vmem:[#allocation14 + $0x8] sm:$0xff]  ;;  %3467 = vmatprep.subr.bf16.mxu0 %v3972_v10  ;;  %v591_v12 = vld [vmem:[#allocation14 + $0x10] sm:$0xff]  ;;  %3328 = vmatprep.mubr.msk.f32.mxu0 %vm3973_vm2, %v3974_v15  ;;  %vm688_vm3 = vcmask 64512  }
  0xff   : > { %562 = vadd.xlane.f32.xlu0 %v561_v1  ;;  %v3468_v9 = vpack.c.bf16 %v590_v8, %v589_v7  ;;  %vm4353_vm1 = vmpackc.low %vm560_vm0, %vm560_vm0  ;;  %v592_v13 = vld [vmem:[#allocation14 + $0x18] sm:$0xff]  ;;  %v4364_v16 = vld [vmem:[#allocation15] sm:$0xff]  ;;  %702 = vst.msk [vmem:[#allocation5] sm:$0xff] %vm688_vm3, %v3974_v15  ;;  %s3975_s19 = smov 104   ;;  %s3976_s28 = smov 112   ;;  %vm693_vm4 = vcmask 7168  }
 0x100   : > { %v3472_v14 = vpack.c.bf16 %v592_v13, %v591_v12  ;;  %3333 = vmatprep.mubr.msk.f32.mxu1 %vm560_vm0, %v4364_v16  ;;  %v3189_v21 = vld [vmem:[#allocation11] ss:$0 sm:$0xff]  ;;  %v3190_v23 = vld [vmem:[#allocation12] ss:$0 sm:$0xff]  ;;  %v4371_v26 = vld [vmem:[#allocation15 + $0x8] sm:$0xff]  ;;  %703 = vst.msk [vmem:[#allocation5 + $0x8] sm:$0xff] %vm688_vm3, %v3974_v15 }
 0x101   : > { %3470 = vmatpush3.bf16.xpose.msk.msra.mxu0 %vm4353_vm1, %v3468_v9  ;;  %v4376_v27 = vld [vmem:[#allocation15 + $0x10] sm:$0xff]  ;;  %v4383_v28 = vld [vmem:[#allocation15 + $0x18] sm:$0xff]  ;;  %704 = vst.msk [vmem:[#allocation5 + $0x10] sm:$0xff] %vm688_vm3, %v3974_v15  ;;  %705 = vst.msk [vmem:[#allocation5 + $0x18] sm:$0xff] %vm688_vm3, %v3974_v15  ;;  %s3977_s22 = smov 120   ;;  %v3978_v54 = vmov -inf  }
 0x102   : > { %3471 = vmatprep.subr.bf16.mxu0 %v3972_v10  ;;  %v4396_v29 = vld [vmem:[#allocation17] sm:$0xff]  ;;  %v4398_v30 = vld [vmem:[#allocation17 + $0x8] sm:$0xff]  ;;  %v4404_v31 = vld [vmem:[#allocation17 + $0x10] sm:$0xff]  ;;  %694 = vst.msk [vmem:[#allocation3] sm:$0xff] %vm693_vm4, %v3978_v54  ;;  %v3979_v58 = vmov 0   ;;  %s4881_s26 = sld [smem:[#allocation27_spill]] }
 0x103   : > { %v4406_v32 = vld [vmem:[#allocation17 + $0x18] sm:$0xff]  ;;  %695 = vst.msk [vmem:[#allocation3 + $0x8] sm:$0xff] %vm693_vm4, %v3978_v54  ;;  %696 = vst.msk [vmem:[#allocation3 + $0x10] sm:$0xff] %vm693_vm4, %v3978_v54  ;;  %3615 = vset.pattern.permute.xlu1 %v3979_v58  ;;  %3616 = vset.pattern.permute.xlu0 %v3979_v58  ;;  %vm2197_vm5 = vcmask 130048   ;;  %s4882_s3 = sld [smem:[#allocation33_spill]]  ;;  %s4883_s27 = sld [smem:[#allocation25_spill]] }
 0x104   : > { %v1641_v40 = vld [vmem:[%s4323_s16 + $0x8] sm:$0xff]  ;;  %v1640_v42 = vld [vmem:[%s4323_s16] sm:$0xff]  ;;  %697 = vst.msk [vmem:[#allocation3 + $0x18] sm:$0xff] %vm693_vm4, %v3978_v54  ;;  %698 = vst.msk [vmem:[#allocation4] sm:$0xff] %vm693_vm4, %v3974_v15  ;;  %s4884_s29 = sld [smem:[#allocation34_spill]]  ;;  %p4885_p10 = scmp.ne.s32.totalorder %s4864_s5, 0 }
 0x105   : > { %v1648_v41 = vsel %vm560_vm0, %v1641_v40, 0.0  ;;  %v1645_v43 = vsel %vm560_vm0, %v1640_v42, 0.0  ;;  %699 = vst.msk [vmem:[#allocation4 + $0x8] sm:$0xff] %vm693_vm4, %v3974_v15  ;;  %700 = vst.msk [vmem:[#allocation4 + $0x10] sm:$0xff] %vm693_vm4, %v3974_v15  ;;  %s3980_s6 = smov [#allocation18]  }
 0x106   : > { %701 = vst.msk [vmem:[#allocation4 + $0x18] sm:$0xff] %vm693_vm4, %v3974_v15  ;;  %s3867_s24 = sshll.u32 %s3980_s6, 4  ;;  %s3868_s24 = int_to_ptr.vmem [resolvable:$false] %s3867_s24 }
 0x107   : > { %s3869_s10 = scalar_lea.vmem %s3868_s24, 256 }
 0x109   : > { %3474 = vmatpush3.bf16.xpose.msk.msra.mxu0 %vm4353_vm1, %v3472_v14  ;;  %v4481_v13 = vld [vmem:[#allocation3] sm:$0xff] }
 0x10a   : > { %3347 = vmatprep.subr.mxu0 %v3974_v15 }
 0x18c   : > { %v563_v2 = vpop.xlane.xlu0 %562 }
 0x18d   : > { %v565_v3 = vmul.f32 0.03125, %v563_v2 }
 0x18f   : > { %v566_v4 = vsub.f32 %v557_v0, %v565_v3 }
 0x191   : > { %v567_v5 = vmul.f32 %v566_v4, %v566_v4 }
 0x193   : > { %v568_v6 = vsel %vm560_vm0, %v567_v5, 0.0 }
 0x194   : > { %569 = vadd.xlane.f32.xlu0 %v568_v6 }
 0x221   : > { %v570_v17 = vpop.xlane.xlu0 %569 }
 0x222   : > { %v571_v18 = vmul.f32 0.03125, %v570_v17 }
 0x224   : > { %v572_v19 = vadd.f32 1e-05, %v571_v18 }
 0x226   : > { %3617 = vrsqrt.f32 %v572_v19 }
 0x230   : > { %v3618_v20 = vpop.eup %3617 }
 0x231   : > { %v574_v22 = vmul.f32 %v3618_v20, %v566_v4  ;;  %v4493_v20 = vld [vmem:[#allocation3 + $0x10] sm:$0xff] }
 0x233   : > { %v581_v24 = vmul.f32 %v3189_v21, %v574_v22 }
 0x235   : > { %v588_v25 = vadd.f32 %v3190_v23, %v581_v24 }
 0x237   : > { %3329 = vmatmul.mubr.msk.f32.vlgmr.msra.gmra.mrb[0].mxu0 %vm560_vm0, %v588_v25  ;;  %3331 = vmatprep.subr.msk.mxu1 %vm560_vm0, %v588_v25 }
 0x238   : > { %3332 = vmatpush3.xpose.msk.msra.mxu1 %vm560_vm0, %v588_v25  ;;  %3349 = vmatprep.mubr.msk.f32.mxu0 %vm3973_vm2, %v3974_v15 }
 0x239   : > { %3339 = vmatprep.subr.msk.mxu1 %vm560_vm0, %v588_v25 }
 0x23b   : > { %3334 = vmatmul.mubr.msk.f32.vlgmr.msra.gmra.mrb[0].mxu1 %vm560_vm0, %v4371_v26 }
 0x23c   : > { %3340 = vmatpush3.xpose.msk.msra.mxu1 %vm560_vm0, %v588_v25  ;;  %3336 = vmatprep.mubr.msk.f32.mxu1 %vm560_vm0, %v4376_v27 }
 0x23d   : > { %3352 = vmatprep.subr.mxu1 %v3974_v15 }
 0x23f   : > { %3337 = vmatmul.mubr.msk.f32.gmra.mrb[2].mxu1 %vm560_vm0, %v4383_v28 }
 0x240   : > { %3341 = vmatprep.mubr.msk.f32.mxu1 %vm560_vm0, %v4396_v29 }
 0x243   : > { %3342 = vmatmul.mubr.msk.f32.vlgmr.msra.gmra.mrb[4].mxu1 %vm560_vm0, %v4398_v30 }
 0x244   : > { %3344 = vmatprep.mubr.msk.f32.mxu1 %vm560_vm0, %v4404_v31 }
 0x247   : > { %3345 = vmatmul.mubr.msk.f32.gmra.mrb[6].mxu1 %vm560_vm0, %v4406_v32 }
 0x248   : > { %3354 = vmatprep.mubr.msk.f32.mxu1 %vm3973_vm2, %v3974_v15 }
 0x30a   : > { %v674_v33 = vpop.f32.mrb[0].mxu0 }
 0x30b   : > { %689 = vst.msk [vmem:[#allocation2] sm:$0xff] %vm688_vm3, %v674_v33  ;;  %685 = vrot.lane.b32.xlu0 %v674_v33, %s3975_s19  ;;  %682 = vrot.lane.b32.xlu1 %v674_v33, %s3976_s28  ;;  %v3330_v34 = vpop.f32.mrb[1].mxu0  ;;  %s3249_s19 = sshll.u32 %s4883_s27, 7  ;;  %s546_s28 = scalar_lea.vmem [#allocation18], %s3182_s7 }
 0x30c   : > { %s4774_s12 = scalar_lea.hbm %s4884_s29, %s3249_s19  ;;  %s2975_s7 = scalar_lea.sflag [#allocation8], %s4319_s8 }
 0x30e   : > { %v3335_v35 = vpop.f32.mrb[0].mxu1 }
 0x30f   : > { %679 = vrot.lane.b32.xlu1 %v674_v33, %s3977_s22  ;;  %v788_v36 = vpop.f32.mrb[1].mxu1  ;;  %3353 = vmatpush3.msra.mxu1 %v3335_v35  ;;  %s2989_s22 = sshll.u32 %s546_s28, 4  ;;  %s4776_s22 = int_to_ptr.vmem [resolvable:$true] %s2989_s22 }
 0x310   : > { %3348 = vmatpush3.msra.mxu0 %v788_v36  ;;  %3362 = vmatprep.subr.mxu1 %v3974_v15  ;;  %p3870_p11 = scmp.lt.s32.totalorder %s4776_s22, %s3868_s24 }
 0x311   : > { %3357 = vmatprep.subr.mxu0 %v3974_v15 }
 0x312   : > { %v4417_v37 = vld [vmem:[#allocation2] sm:$0xff]  ;;  %v3338_v38 = vpop.f32.mrb[2].mxu1 }
 0x313   : > { %3350 = vmatmul.mubr.msk.f32.vlgmr.msra.gmra.mrb[2].mxu0 %vm688_vm3, %v4417_v37  ;;  %v798_v39 = vpop.f32.mrb[3].mxu1 }
 0x314   : > { %3358 = vmatpush3.msra.mxu0 %v798_v39  ;;  %3359 = vmatprep.mubr.msk.f32.mxu0 %vm3973_vm2, %v3974_v15 }
 0x315   : > { %3367 = vmatprep.subr.mxu0 %v3974_v15 }
 0x316   : > { %v3343_v50 = vpop.f32.mrb[4].mxu1 }
 0x317   : > { %v889_v51 = vpop.f32.mrb[5].mxu1 }
 0x31a   : > { %v4452_v52 = vpop.f32.mrb[6].mxu1 }
 0x31b   : > { %v4455_v53 = vpop.f32.mrb[7].mxu1 }
 0x32a   : > { %1649 = vadd.xlane.f32.xlu0 %v1648_v41 }
 0x333   : > { %1646 = vadd.xlane.f32.xlu1 %v1645_v43  ;;  %v3218_v43 = vld [vmem:[%s4826_s2] ss:$0 sm:$0xff] }
 0x37d   : > { %v686_v44 = vpop.permute.xlu0 %685  ;;  %v683_v45 = vpop.permute.xlu1 %682 }
 0x37e   : > { %692 = vst.msk [vmem:[#allocation2 + $0x18] sm:$0xff] %vm688_vm3, %v686_v44  ;;  %691 = vst.msk [vmem:[#allocation2 + $0x10] sm:$0xff] %vm688_vm3, %v683_v45 }
 0x381   : > { %v680_v46 = vpop.permute.xlu1 %679 }
 0x382   : > { %690 = vst.msk [vmem:[#allocation2 + $0x8] sm:$0xff] %vm688_vm3, %v680_v46 }
 0x385   : > { %v4431_v47 = vld [vmem:[#allocation2 + $0x10] sm:$0xff]  ;;  %v4444_v49 = vld [vmem:[#allocation2 + $0x18] sm:$0xff] }
 0x386   : > { %3360 = vmatmul.mubr.msk.f32.vlgmr.msra.gmra.mrb[4].mxu0 %vm688_vm3, %v4431_v47 }
 0x387   : > { %3369 = vmatprep.mubr.msk.f32.mxu0 %vm3973_vm2, %v3974_v15  ;;  %3368 = vmatpush3.xpose.msk.msra.mxu0 %vm688_vm3, %v889_v51 }
 0x388   : > { %3377 = vmatprep.subr.mxu0 %v3974_v15 }
 0x389   : > { %v4437_v48 = vld [vmem:[#allocation2 + $0x8] sm:$0xff] }
 0x38a   : > { %3355 = vmatmul.mubr.msk.f32.vlgmr.msra.gmra.mrb[8].mxu1 %vm688_vm3, %v4437_v48 }
 0x38b   : > { %3363 = vmatpush3.msra.mxu1 %v3338_v38  ;;  %3364 = vmatprep.mubr.msk.f32.mxu1 %vm3973_vm2, %v3974_v15 }
 0x38c   : > { %3372 = vmatprep.subr.mxu1 %v3974_v15 }
 0x38e   : > { %3365 = vmatmul.mubr.msk.f32.vlgmr.msra.gmra.mrb[10].mxu1 %vm688_vm3, %v4444_v49 }
 0x38f   : > { %3374 = vmatprep.mubr.msk.f32.mxu1 %vm3973_vm2, %v3974_v15 }
 0x392   : > { %3373 = vmatpush3.xpose.msk.msra.mxu1 %vm688_vm3, %v3343_v50  ;;  %v3219_v50 = vld [vmem:[%s4881_s26] ss:$0 sm:$0xff]  ;;  %s3863_s26 = scalar_lea.vmem %s4776_s22, 128 }
 0x393   : > { %3382 = vmatprep.subr.mxu1 %v3974_v15  ;;  %p3864_p3 = scmp.ne.s32.totalorder %s4776_s22, %s3863_s26  ;;  %p3871_p12 = scmp.lt.s32.totalorder %s3869_s10, %s3863_s26 }
 0x395   : > { %p3865_p13 = pnand %p3864_p3, %p4885_p10  ;;  %p3872_p4 = por %p3871_p12, %p3870_p11 }
 0x397   : > { %p3866_p2 = pneg %p3865_p13 }
 0x399   : > { %p3873_p6 = pnand %p3872_p4, %p3866_p2 }
 0x3b7   : > { %v1650_v61 = vpop.xlane.xlu0 %1649 }
 0x3b8   : > { %v1653_v63 = vmul.f32 0.03125, %v1650_v61 }
 0x3ba   : > { %v1655_v0 = vsub.f32 %v1641_v40, %v1653_v63 }
 0x3bc   : > { %v1657_v6 = vmul.f32 %v1655_v0, %v1655_v0 }
 0x3be   : > { %v1661_v9 = vsel %vm560_vm0, %v1657_v6, 0.0 }
 0x3c0   : > { %v1647_v59 = vpop.xlane.xlu1 %1646 }
 0x3c1   : > { %v1652_v60 = vmul.f32 0.03125, %v1647_v59  ;;  %v4521_v59 = vld [vmem:[#allocation3 + $0x8] sm:$0xff] }
 0x3c3   : > { %v1654_v62 = vsub.f32 %v1640_v42, %v1652_v60 }
 0x3c5   : > { %v1656_v1 = vmul.f32 %v1654_v62, %v1654_v62 }
 0x3c7   : > { %v1658_v5 = vsel %vm560_vm0, %v1656_v1, 0.0 }
 0x3e6   : > { %v981_v55 = vpop.f32.mrb[2].mxu0 }
 0x3e7   : > { %v3351_v56 = vpop.f32.mrb[3].mxu0  ;;  %v1208_v57 = vsel %vm688_vm3, %v981_v55, -inf }
 0x3e8   : > { %1209 = vmax.xlane.f32.xlu1 %v1208_v57 }
 0x459   : > { %v4471_v2 = vpop.f32.mrb[4].mxu0 }
 0x45a   : > { %v3361_v3 = vpop.f32.mrb[5].mxu0  ;;  %v1214_v4 = vsel %vm688_vm3, %v4471_v2, -inf }
 0x45b   : > { %1215 = vmax.xlane.f32.xlu1 %v1214_v4 }
 0x45d   : > { %v4476_v7 = vpop.f32.mrb[8].mxu1 }
 0x45e   : > { %v3356_v8 = vpop.f32.mrb[9].mxu1  ;;  %v1211_v19 = vsel %vm688_vm3, %v4476_v7, -inf }
 0x45f   : > { %1659 = vadd.xlane.f32.xlu1 %v1658_v5 }
 0x461   : > { %v4479_v10 = vpop.f32.mrb[10].mxu1 }
 0x462   : > { %v3366_v12 = vpop.f32.mrb[11].mxu1  ;;  %v1217_v58 = vsel %vm688_vm3, %v4479_v10, -inf }
 0x463   : > { %1662 = vadd.xlane.f32.xlu1 %v1661_v9 }
 0x475   : > { %v1210_v14 = vpop.xlane.xlu1 %1209 }
 0x476   : > { %v4484_v17 = vmax.f32 %v4481_v13, %v1210_v14 }
 0x478   : > { %v1224_v18 = vsub.f32 %v4481_v13, %v4484_v17  ;;  %1636 = vst.msk [vmem:[#allocation3] sm:$0xff] %vm693_vm4, %v4484_v17  ;;  %1238 = vperm.xlu1 %3615, %v4484_v17  }
 0x49c   : > { %1212 = vmax.xlane.f32.xlu1 %v1211_v19 }
 0x4e8   : > { %v1216_v21 = vpop.xlane.xlu1 %1215 }
 0x4e9   : > { %v4496_v22 = vmax.f32 %v4493_v20, %v1216_v21 }
 0x4eb   : > { %v1226_v23 = vsub.f32 %v4493_v20, %v4496_v22  ;;  %1638 = vst.msk [vmem:[#allocation3 + $0x10] sm:$0xff] %vm693_vm4, %v4496_v22  ;;  %1248 = vperm.xlu0 %3616, %v4496_v22  }
 0x4ec   : > { %v1660_v24 = vpop.xlane.xlu1 %1659 }
 0x4ed   : > { %v1664_v25 = vmul.f32 0.03125, %v1660_v24  ;;  %v1232_v13 = vmul.f32 1.442695, %v1226_v23 }
 0x4ef   : > { %v1666_v33 = vadd.f32 1e-05, %v1664_v25 }
 0x4f0   : > { %v1663_v34 = vpop.xlane.xlu1 %1662 }
 0x4f1   : > { %3619 = vrsqrt.f32 %v1666_v33  ;;  %v1665_v35 = vmul.f32 0.03125, %v1663_v34 }
 0x4f3   : > { %v1667_v36 = vadd.f32 1e-05, %v1665_v35 }
 0x4f5   : > { %3621 = vrsqrt.f32 %v1667_v36 }
 0x4f7   : > { %v1239_v38 = vpop.permute.xlu1 %1238 }
 0x4f8   : > { %v1256_v39 = vsub.f32 %v981_v55, %v1239_v38 }
 0x4fa   : > { %v1260_v40 = vmul.f32 1.442695, %v1256_v39 }
 0x4fb   : > { %v3620_v41 = vpop.eup %3619 }
 0x4fc   : > { %v1670_v42 = vmul.f32 %v3620_v41, %v1654_v62  ;;  %3623 = vpow2.f32 %v1260_v40 }
 0x4fe   : > { %v1678_v46 = vmul.f32 %v3218_v43, %v1670_v42 }
 0x4ff   : > { %v3622_v44 = vpop.eup %3621 }
 0x500   : > { %v1671_v45 = vmul.f32 %v3622_v44, %v1655_v0  ;;  %v1686_v54 = vadd.f32 %v3219_v50, %v1678_v46 }
 0x502   : > { %v1679_v51 = vmul.f32 %v3218_v43, %v1671_v45 }
 0x504   : > { %v1687_v56 = vadd.f32 %v3219_v50, %v1679_v51  ;;  %v4633_v51 = vld [vmem:[#allocation3] sm:$0xff] }
 0x506   : > { %v4509_v57 = vpop.eup %3623  ;;  %v3475_v55 = vpack.c.bf16 %v1687_v56, %v1686_v54 }
 0x507   : > { %3370 = vmatmul.mubr.msk.f32.vlgmr.msra.gmra.mrb[6].mxu0 %vm688_vm3, %v4509_v57 }
 0x508   : > { %3378 = vmatpush3.xpose.msk.msra.mxu0 %vm688_vm3, %v4455_v53  ;;  %3379 = vmatprep.mubr.msk.f32.mxu0 %vm3973_vm2, %v3974_v15 }
 0x509   : > { %3477 = vmatprep.subr.msk.bf16.mxu0 %vm4353_vm1, %v3475_v55 }
 0x50a   : > { %1218 = vmax.xlane.f32.xlu0 %v1217_v58 }
 0x529   : > { %v1213_v60 = vpop.xlane.xlu1 %1212 }
 0x52a   : > { %v4524_v61 = vmax.f32 %v4521_v59, %v1213_v60  ;;  %v4647_v60 = vld [vmem:[#allocation3 + $0x10] sm:$0xff] }
 0x52c   : > { %v1225_v62 = vsub.f32 %v4521_v59, %v4524_v61  ;;  %1637 = vst.msk [vmem:[#allocation3 + $0x8] sm:$0xff] %vm693_vm4, %v4524_v61  ;;  %1243 = vperm.xlu1 %3615, %v4524_v61  }
 0x533   : > { %v4628_v45 = vld [vmem:[#allocation3 + $0x8] sm:$0xff] }
 0x56a   : > { %v1249_v53 = vpop.permute.xlu0 %1248 }
 0x56b   : > { %v1258_v63 = vsub.f32 %v4471_v2, %v1249_v53  ;;  %v4549_v2 = vld [vmem:[#allocation3 + $0x18] sm:$0xff] }
 0x56d   : > { %v1264_v0 = vmul.f32 1.442695, %v1258_v63 }
 0x56f   : > { %3625 = vpow2.f32 %v1264_v0 }
 0x579   : > { %v4532_v1 = vpop.eup %3625 }
 0x57a   : > { %3380 = vmatmul.mubr.msk.f32.vlgmr.msra.gmra.mrb[8].mxu0 %vm688_vm3, %v4532_v1 }
 0x57b   : > { %3480 = vmatpush3.bf16.xpose.msk.msra.mxu0 %vm4353_vm1, %v3475_v55  ;;  %3391 = vmatprep.mubr.msk.f32.mxu0 %vm560_vm0, %v4364_v16 }
 0x57c   : > { %3407 = vmatprep.subr.mxu0 %v3974_v15 }
 0x582   : > { %3392 = vmatmul.mubr.msk.f32.vlgmr.msra.gmra.mrb[10].mxu0 %vm560_vm0, %v4371_v26 }
 0x583   : > { %3394 = vmatprep.mubr.msk.f32.mxu0 %vm560_vm0, %v4376_v27 }
 0x586   : > { %3395 = vmatmul.mubr.msk.f32.gmra.mrb[12].mxu0 %vm560_vm0, %v4383_v28 }
 0x587   : > { %3409 = vmatprep.mubr.msk.f32.mxu0 %vm3973_vm2, %v3974_v15 }
 0x597   : > { %v1219_v3 = vpop.xlane.xlu0 %1218 }
 0x598   : > { %v4552_v4 = vmax.f32 %v4549_v2, %v1219_v3 }
 0x59a   : > { %v1227_v16 = vsub.f32 %v4549_v2, %v4552_v4  ;;  %1639 = vst.msk [vmem:[#allocation3 + $0x18] sm:$0xff] %vm693_vm4, %v4552_v4  ;;  %1253 = vperm.xlu1 %3615, %v4552_v4   ;;  %v1268_v4 = vld [vmem:[#allocation4] sm:$0xff] }
 0x59c   : > { %v1234_v17 = vmul.f32 1.442695, %v1227_v16  ;;  %v1269_v16 = vld [vmem:[#allocation4 + $0x8] sm:$0xff] }
 0x5a1   : > { %v4658_v3 = vld [vmem:[#allocation3 + $0x18] sm:$0xff] }
 0x5ab   : > { %v1244_v26 = vpop.permute.xlu1 %1243 }
 0x5ac   : > { %v1257_v27 = vsub.f32 %v4476_v7, %v1244_v26 }
 0x5ae   : > { %v1262_v28 = vmul.f32 1.442695, %v1257_v27 }
 0x5b0   : > { %3627 = vpow2.f32 %v1262_v28 }
 0x5ba   : > { %v4560_v5 = vpop.eup %3627 }
 0x5bb   : > { %3375 = vmatmul.mubr.msk.f32.vlgmr.msra.gmra.mrb[12].mxu1 %vm688_vm3, %v4560_v5 }
 0x5bc   : > { %3383 = vmatpush3.xpose.msk.msra.mxu1 %vm688_vm3, %v4452_v52  ;;  %3384 = vmatprep.mubr.msk.f32.mxu1 %vm3973_vm2, %v3974_v15 }
 0x5bd   : > { %3483 = vmatprep.subr.msk.bf16.mxu1 %vm4353_vm1, %v3475_v55 }
 0x5da   : > { %v4570_v6 = vpop.f32.mrb[6].mxu0 }
 0x5db   : > { %v3371_v8 = vpop.f32.mrb[7].mxu0 }
 0x5dc   : > { %v1276_v8 = vsel %vm688_vm3, %v4509_v57, 0.0 }
 0x619   : > { %v1254_v7 = vpop.permute.xlu1 %1253 }
 0x61a   : > { %v1259_v9 = vsub.f32 %v4479_v10, %v1254_v7  ;;  %v1279_v7 = vsel %vm688_vm3, %v4560_v5, 0.0 }
 0x61c   : > { %v1266_v12 = vmul.f32 1.442695, %v1259_v9  ;;  %v1282_v9 = vsel %vm688_vm3, %v4532_v1, 0.0 }
 0x61e   : > { %3629 = vpow2.f32 %v1266_v12 }
 0x628   : > { %v4573_v14 = vpop.eup %3629 }
 0x629   : > { %3385 = vmatmul.mubr.msk.f32.vlgmr.msra.gmra.mrb[14].mxu1 %vm688_vm3, %v4573_v14  ;;  %v1285_v12 = vsel %vm688_vm3, %v4573_v14, 0.0 }
 0x62a   : > { %3486 = vmatpush3.bf16.xpose.msk.msra.mxu1 %vm4353_vm1, %v3475_v55  ;;  %3401 = vmatprep.mubr.msk.f32.mxu1 %vm560_vm0, %v4396_v29 }
 0x62b   : > { %3412 = vmatprep.subr.mxu1 %v3974_v15 }
 0x631   : > { %3402 = vmatmul.mubr.msk.f32.vlgmr.msra.gmra.mrb[16].mxu1 %vm560_vm0, %v4398_v30 }
 0x632   : > { %3404 = vmatprep.mubr.msk.f32.mxu1 %vm560_vm0, %v4404_v31 }
 0x635   : > { %3405 = vmatmul.mubr.msk.f32.gmra.mrb[18].mxu1 %vm560_vm0, %v4406_v32 }
 0x636   : > { %3414 = vmatprep.mubr.msk.f32.mxu1 %vm3973_vm2, %v3974_v15 }
 0x64d   : > { %v4590_v52 = vpop.f32.mrb[8].mxu0 }
 0x64e   : > { %v3381_v11 = vpop.f32.mrb[9].mxu0 }
 0x655   : > { %v3393_v10 = vpop.f32.mrb[10].mxu0 }
 0x656   : > { %v1776_v19 = vpop.f32.mrb[11].mxu0  ;;  %3413 = vmatpush3.msra.mxu1 %v3393_v10 }
 0x657   : > { %3408 = vmatpush3.msra.mxu0 %v1776_v19  ;;  %3415 = vmatmul.mubr.msk.f32.vlgmr.msra.gmra.mrb[20].mxu1 %vm688_vm3, %v4437_v48 }
 0x658   : > { %3410 = vmatmul.mubr.msk.f32.vlgmr.msra.gmra.mrb[14].mxu0 %vm688_vm3, %v4417_v37  ;;  %3422 = vmatprep.subr.mxu1 %v3974_v15 }
 0x659   : > { %v3396_v29 = vpop.f32.mrb[12].mxu0  ;;  %3417 = vmatprep.subr.mxu0 %v3974_v15  ;;  %3424 = vmatprep.mubr.msk.f32.mxu1 %vm3973_vm2, %v3974_v15 }
 0x65a   : > { %v1786_v30 = vpop.f32.mrb[13].mxu0  ;;  %3423 = vmatpush3.msra.mxu1 %v3396_v29  ;;  %3419 = vmatprep.mubr.msk.f32.mxu0 %vm3973_vm2, %v3974_v15 }
 0x65b   : > { %3418 = vmatpush3.msra.mxu0 %v1786_v30  ;;  %3425 = vmatmul.mubr.msk.f32.vlgmr.msra.gmra.mrb[22].mxu1 %vm688_vm3, %v4444_v49 }
 0x65c   : > { %3420 = vmatmul.mubr.msk.f32.vlgmr.msra.gmra.mrb[16].mxu0 %vm688_vm3, %v4431_v47  ;;  %3427 = vmatprep.subr.mxu0 %v3974_v15 }
 0x65d   : > { %3432 = vmatprep.subr.mxu1 %v3974_v15  ;;  %3429 = vmatprep.mubr.msk.f32.mxu0 %vm3973_vm2, %v3974_v15 }
 0x65e   : > { %3434 = vmatprep.mubr.msk.f32.mxu1 %vm3973_vm2, %v3974_v15 }
 0x68e   : > { %v4612_v31 = vpop.f32.mrb[12].mxu1 }
 0x68f   : > { %v3376_v32 = vpop.f32.mrb[13].mxu1 }
 0x6fc   : > { %v4614_v37 = vpop.f32.mrb[14].mxu1 }
 0x6fd   : > { %v3386_v48 = vpop.f32.mrb[15].mxu1 }
 0x704   : > { %v3403_v49 = vpop.f32.mrb[16].mxu1 }
 0x705   : > { %v1877_v21 = vpop.f32.mrb[17].mxu1  ;;  %3433 = vmatpush3.xpose.msk.msra.mxu1 %vm2197_vm5, %v3403_v49 }
 0x706   : > { %3428 = vmatpush3.xpose.msk.msra.mxu0 %vm2197_vm5, %v1877_v21  ;;  %3442 = vmatprep.subr.mxu1 %v3974_v15 }
 0x707   : > { %3437 = vmatprep.subr.mxu0 %v3974_v15 }
 0x708   : > { %v4620_v47 = vpop.f32.mrb[18].mxu1 }
 0x709   : > { %v4622_v24 = vpop.f32.mrb[19].mxu1 }
 0x72a   : > { %v2043_v25 = vpop.f32.mrb[20].mxu1 }
 0x72b   : > { %v1970_v33 = vpop.f32.mrb[14].mxu0  ;;  %v3416_v34 = vpop.f32.mrb[21].mxu1  ;;  %v2201_v35 = vsel %vm2197_vm5, %v2043_v25, -inf }
 0x72c   : > { %2202 = vmax.xlane.f32.xlu0 %v2201_v35  ;;  %v3411_v36 = vpop.f32.mrb[15].mxu0  ;;  %v2198_v38 = vsel %vm2197_vm5, %v1970_v33, -inf }
 0x72d   : > { %2199 = vmax.xlane.f32.xlu1 %v2198_v38  ;;  %v1228_v38 = vmul.f32 1.442695, %v1224_v18  ;;  %v1230_v18 = vmul.f32 1.442695, %v1225_v62 }
 0x72e   : > { %v2189_v39 = vpop.f32.mrb[22].mxu1 }
 0x72f   : > { %v2116_v40 = vpop.f32.mrb[16].mxu0  ;;  %v3426_v41 = vpop.f32.mrb[23].mxu1  ;;  %v2207_v44 = vsel %vm2197_vm5, %v2189_v39, -inf }
 0x730   : > { %v3421_v42 = vpop.f32.mrb[17].mxu0  ;;  %v2204_v43 = vsel %vm2197_vm5, %v2116_v40, -inf }
 0x731   : > { %2205 = vmax.xlane.f32.xlu0 %v2204_v43 }
 0x735   : > { %2208 = vmax.xlane.f32.xlu0 %v2207_v44 }
 0x7b9   : > { %v2203_v46 = vpop.xlane.xlu0 %2202 }
 0x7ba   : > { %v4631_v50 = vmax.f32 %v4628_v45, %v2203_v46  ;;  %v2200_v54 = vpop.xlane.xlu1 %2199  ;;  %v1270_v46 = vld [vmem:[#allocation4 + $0x10] sm:$0xff] }
 0x7bb   : > { %v4636_v56 = vmax.f32 %v4633_v51, %v2200_v54 }
 0x7bc   : > { %v2215_v55 = vsub.f32 %v4628_v45, %v4631_v50  ;;  %2628 = vst.msk [vmem:[#allocation3 + $0x8] sm:$0xff] %vm693_vm4, %v4631_v50 }
 0x7bd   : > { %v2214_v58 = vsub.f32 %v4633_v51, %v4636_v56  ;;  %2627 = vst.msk [vmem:[#allocation3] sm:$0xff] %vm693_vm4, %v4636_v56  ;;  %2228 = vperm.xlu0 %3616, %v4636_v56  }
 0x7be   : > { %v2206_v53 = vpop.xlane.xlu0 %2205 }
 0x7bf   : > { %v4650_v63 = vmax.f32 %v4647_v60, %v2206_v53  ;;  %v2218_v20 = vmul.f32 1.442695, %v2214_v58 }
 0x7c1   : > { %v2216_v0 = vsub.f32 %v4647_v60, %v4650_v63  ;;  %2629 = vst.msk [vmem:[#allocation3 + $0x10] sm:$0xff] %vm693_vm4, %v4650_v63  ;;  %2233 = vperm.xlu0 %3616, %v4631_v50   ;;  %2238 = vperm.xlu1 %3615, %v4650_v63   ;;  %v1271_v60 = vld [vmem:[#allocation4 + $0x18] sm:$0xff] }
 0x7c2   : > { %v2209_v26 = vpop.xlane.xlu0 %2208 }
 0x7c3   : > { %v4661_v27 = vmax.f32 %v4658_v3, %v2209_v26  ;;  %v2222_v59 = vmul.f32 1.442695, %v2216_v0 }
 0x7c5   : > { %v2217_v28 = vsub.f32 %v4658_v3, %v4661_v27  ;;  %2630 = vst.msk [vmem:[#allocation3 + $0x18] sm:$0xff] %vm693_vm4, %v4661_v27  ;;  %2243 = vperm.xlu0 %3616, %v4661_v27  }
 0x7c7   : > { %v2224_v22 = vmul.f32 1.442695, %v2217_v28 }
 0x7e4   : > { %1277 = vadd.xlane.f32.xlu0 %v1276_v8 }
 0x7e5   : > { %1280 = vadd.xlane.f32.xlu1 %v1279_v7 }
 0x7e8   : > { %1283 = vadd.xlane.f32.xlu0 %v1282_v9 }
 0x7ec   : > { %1286 = vadd.xlane.f32.xlu0 %v1285_v12 }
 0x83c   : > { %v2229_v11 = vpop.permute.xlu0 %2228 }
 0x83d   : > { %v2246_v10 = vsub.f32 %v1970_v33, %v2229_v11 }
 0x83f   : > { %v2250_v19 = vmul.f32 1.442695, %v2246_v10 }
 0x840   : > { %v2239_v29 = vpop.permute.xlu1 %2238  ;;  %v2234_v30 = vpop.permute.xlu0 %2233 }
 0x841   : > { %3631 = vpow2.f32 %v2250_v19  ;;  %v2248_v57 = vsub.f32 %v2116_v40, %v2239_v29  ;;  %v2247_v32 = vsub.f32 %v2043_v25, %v2234_v30 }
 0x843   : > { %v2254_v48 = vmul.f32 1.442695, %v2248_v57  ;;  %v2252_v49 = vmul.f32 1.442695, %v2247_v32  ;;  %v1296_v32 = vld [vmem:[#allocation5] sm:$0xff] }
 0x844   : > { %v2244_v5 = vpop.permute.xlu0 %2243 }
 0x845   : > { %3633 = vpow2.f32 %v2254_v48  ;;  %v2249_v21 = vsub.f32 %v2189_v39, %v2244_v5 }
 0x846   : > { %3635 = vpow2.f32 %v2252_v49 }
 0x847   : > { %v2256_v1 = vmul.f32 1.442695, %v2249_v21 }
 0x849   : > { %3637 = vpow2.f32 %v2256_v1 }
 0x84a   : > { %3639 = vpow2.f32 %v1228_v38 }
 0x84b   : > { %v3632_v34 = vpop.eup %3631  ;;  %3641 = vpow2.f32 %v1232_v13 }
 0x84c   : > { %3430 = vmatmul.mubr.msk.f32.vlgmr.msra.gmra.mrb[18].mxu0 %vm2197_vm5, %v3632_v34  ;;  %v2266_v14 = vsel %vm2197_vm5, %v3632_v34, 0.0  ;;  %3643 = vpow2.f32 %v1234_v17  ;;  %v1298_v34 = vld [vmem:[#allocation5 + $0x10] sm:$0xff] }
 0x84d   : > { %3438 = vmatpush3.xpose.msk.msra.mxu0 %vm2197_vm5, %v4622_v24  ;;  %2267 = vadd.xlane.f32.xlu0 %v2266_v14  ;;  %3645 = vpow2.f32 %v1230_v18 }
 0x84e   : > { %3439 = vmatprep.mubr.msk.f32.mxu0 %vm3973_vm2, %v3974_v15  ;;  %3447 = vmatprep.subr.mxu0 %v3974_v15 }
 0x84f   : > { %v3634_v25 = vpop.eup %3633 }
 0x850   : > { %v3636_v33 = vpop.eup %3635  ;;  %3440 = vmatmul.mubr.msk.f32.vlgmr.msra.gmra.mrb[20].mxu0 %vm2197_vm5, %v3634_v25  ;;  %v2272_v35 = vsel %vm2197_vm5, %v3634_v25, 0.0 }
 0x851   : > { %3435 = vmatmul.mubr.msk.f32.vlgmr.msra.gmra.mrb[24].mxu1 %vm2197_vm5, %v3636_v33  ;;  %2273 = vadd.xlane.f32.xlu1 %v2272_v35  ;;  %v2269_v36 = vsel %vm2197_vm5, %v3636_v33, 0.0 }
 0x852   : > { %3443 = vmatpush3.xpose.msk.msra.mxu1 %vm2197_vm5, %v4620_v47  ;;  %2270 = vadd.xlane.f32.xlu0 %v2269_v36  ;;  %v2220_v47 = vmul.f32 1.442695, %v2215_v55  ;;  %v1299_v36 = vld [vmem:[#allocation5 + $0x18] sm:$0xff] }
 0x853   : > { %v3638_v24 = vpop.eup %3637  ;;  %3444 = vmatprep.mubr.msk.f32.mxu1 %vm3973_vm2, %v3974_v15  ;;  %3449 = vmatprep.mubr.msk.f32.mxu0 %vm3973_vm2, %v3974_v15 }
 0x854   : > { %v2275_v39 = vsel %vm2197_vm5, %v3638_v24, 0.0  ;;  %3452 = vmatprep.subr.mxu1 %v3974_v15  ;;  %v3640_v40 = vpop.eup %3639  ;;  %3647 = vpow2.f32 %v2220_v47 }
 0x855   : > { %3445 = vmatmul.mubr.msk.f32.vlgmr.msra.gmra.mrb[26].mxu1 %vm2197_vm5, %v3638_v24  ;;  %v3642_v23 = vpop.eup %3641  ;;  %3649 = vpow2.f32 %v2218_v20  ;;  %v1272_v42 = vmul.f32 %v3640_v40, %v1268_v4 }
 0x856   : > { %2276 = vadd.xlane.f32.xlu0 %v2275_v39  ;;  %3454 = vmatprep.mubr.msk.f32.mxu1 %vm3973_vm2, %v3974_v15  ;;  %3651 = vpow2.f32 %v2224_v22  ;;  %v3644_v61 = vpop.eup %3643  ;;  %v1274_v55 = vmul.f32 %v3642_v23, %v1270_v46  ;;  %v1297_v39 = vld [vmem:[#allocation5 + $0x8] sm:$0xff] }
 0x857   : > { %3653 = vpow2.f32 %v2222_v59  ;;  %v3646_v62 = vpop.eup %3645  ;;  %v1275_v63 = vmul.f32 %v3644_v61, %v1271_v60 }
 0x858   : > { %v1273_v45 = vmul.f32 %v3646_v62, %v1269_v16 }
 0x85e   : > { %v3648_v2 = vpop.eup %3647 }
 0x85f   : > { %v3650_v41 = vpop.eup %3649 }
 0x860   : > { %v3652_v43 = vpop.eup %3651 }
 0x861   : > { %v3654_v54 = vpop.eup %3653 }
 0x862   : > { %1302 = vperm.xlu1 %3615, %v3640_v40  }
 0x866   : > { %1312 = vperm.xlu1 %3615, %v3642_v23  }
 0x86a   : > { %1317 = vperm.xlu1 %3615, %v3644_v61  }
 0x86c   : > { %1307 = vperm.xlu0 %3616, %v3646_v62  }
 0x86e   : > { %2298 = vperm.xlu1 %3615, %v3648_v2  }
 0x870   : > { %2293 = vperm.xlu0 %3616, %v3650_v41  }
 0x871   : > { %v1278_v44 = vpop.xlane.xlu0 %1277 }
 0x872   : > { %v1288_v50 = vadd.f32 %v1278_v44, %v1272_v42  ;;  %v1281_v51 = vpop.xlane.xlu1 %1280  ;;  %2308 = vperm.xlu1 %3615, %v3652_v43  }
 0x873   : > { %v1289_v56 = vadd.f32 %v1281_v51, %v1273_v45 }
 0x874   : > { %1292 = vst.msk [vmem:[#allocation4] sm:$0xff] %vm693_vm4, %v1288_v50  ;;  %2303 = vperm.xlu0 %3616, %v3654_v54  }
 0x875   : > { %1293 = vst.msk [vmem:[#allocation4 + $0x8] sm:$0xff] %vm693_vm4, %v1289_v56  ;;  %v1284_v58 = vpop.xlane.xlu0 %1283 }
 0x876   : > { %v1290_v53 = vadd.f32 %v1284_v58, %v1274_v55 }
 0x878   : > { %1294 = vst.msk [vmem:[#allocation4 + $0x10] sm:$0xff] %vm693_vm4, %v1290_v53 }
 0x879   : > { %v1287_v0 = vpop.xlane.xlu0 %1286 }
 0x87a   : > { %v1291_v3 = vadd.f32 %v1287_v0, %v1275_v63 }
 0x87b   : > { %v2258_v26 = vld [vmem:[#allocation4] sm:$0xff] }
 0x87c   : > { %1295 = vst.msk [vmem:[#allocation4 + $0x18] sm:$0xff] %vm693_vm4, %v1291_v3  ;;  %v2262_v27 = vmul.f32 %v3650_v41, %v2258_v26  ;;  %v2259_v9 = vld [vmem:[#allocation4 + $0x8] sm:$0xff] }
 0x87d   : > { %v2263_v10 = vmul.f32 %v3648_v2, %v2259_v9 }
 0x87f   : > { %v2260_v8 = vld [vmem:[#allocation4 + $0x10] sm:$0xff] }
 0x880   : > { %v2264_v12 = vmul.f32 %v3654_v54, %v2260_v8 }
 0x883   : > { %v2261_v30 = vld [vmem:[#allocation4 + $0x18] sm:$0xff] }
 0x884   : > { %v2265_v49 = vmul.f32 %v3652_v43, %v2261_v30 }
 0x8da   : > { %v2268_v28 = vpop.xlane.xlu0 %2267 }
 0x8db   : > { %v2278_v7 = vadd.f32 %v2268_v28, %v2262_v27 }
 0x8dd   : > { %2283 = vst.msk [vmem:[#allocation4] sm:$0xff] %vm693_vm4, %v2278_v7 }
 0x8de   : > { %v2274_v11 = vpop.xlane.xlu1 %2273 }
 0x8df   : > { %v2280_v19 = vadd.f32 %v2274_v11, %v2264_v12  ;;  %v2271_v29 = vpop.xlane.xlu0 %2270  ;;  %v2672_v12 = vld [vmem:[%s4882_s3 + $0x10] sm:$0xff] }
 0x8e0   : > { %v2279_v57 = vadd.f32 %v2271_v29, %v2263_v10 }
 0x8e1   : > { %2285 = vst.msk [vmem:[#allocation4 + $0x10] sm:$0xff] %vm693_vm4, %v2280_v19 }
 0x8e2   : > { %2284 = vst.msk [vmem:[#allocation4 + $0x8] sm:$0xff] %vm693_vm4, %v2279_v57  ;;  %v1303_v48 = vpop.permute.xlu1 %1302 }
 0x8e3   : > { %v1320_v5 = vmul.f32 %v1303_v48, %v1296_v32  ;;  %v2277_v21 = vpop.xlane.xlu0 %2276  ;;  %v2673_v32 = vld [vmem:[%s4882_s3 + $0x18] sm:$0xff] }
 0x8e4   : > { %v2281_v1 = vadd.f32 %v2277_v21, %v2265_v49  ;;  %v2638_v14 = vld [vmem:[#allocation4] sm:$0xff] }
 0x8e5   : > { %v1628_v25 = vadd.f32 %v4570_v6, %v1320_v5  ;;  %3655 = vrcp.f32 %v2638_v14 }
 0x8e6   : > { %2286 = vst.msk [vmem:[#allocation4 + $0x18] sm:$0xff] %vm693_vm4, %v2281_v1  ;;  %v1313_v33 = vpop.permute.xlu1 %1312 }
 0x8e7   : > { %1632 = vst.msk [vmem:[#allocation5] sm:$0xff] %vm688_vm3, %v1628_v25  ;;  %v1322_v35 = vmul.f32 %v1313_v33, %v1298_v34 }
 0x8e8   : > { %v2640_v24 = vld [vmem:[#allocation4 + $0x10] sm:$0xff] }
 0x8e9   : > { %v1630_v38 = vadd.f32 %v4590_v52, %v1322_v35  ;;  %3657 = vrcp.f32 %v2640_v24  ;;  %v2639_v13 = vld [vmem:[#allocation4 + $0x8] sm:$0xff]  ;;  %v2670_v52 = vld [vmem:[%s4882_s3] sm:$0xff] }
 0x8ea   : > { %v1318_v17 = vpop.permute.xlu1 %1317  ;;  %3659 = vrcp.f32 %v2639_v13  ;;  %3448 = vmatpush3.msra.mxu0 %v2670_v52 }
 0x8eb   : > { %1634 = vst.msk [vmem:[#allocation5 + $0x10] sm:$0xff] %vm688_vm3, %v1630_v38  ;;  %v1323_v18 = vmul.f32 %v1318_v17, %v1299_v36  ;;  %v1308_v6 = vpop.permute.xlu0 %1307  ;;  %3457 = vmatprep.subr.mxu0 %v3974_v15 }
 0x8ec   : > { %v1321_v47 = vmul.f32 %v1308_v6, %v1297_v39 }
 0x8ed   : > { %v1631_v40 = vadd.f32 %v4614_v37, %v1323_v18  ;;  %v2641_v20 = vld [vmem:[#allocation4 + $0x18] sm:$0xff] }
 0x8ee   : > { %v1629_v22 = vadd.f32 %v4612_v31, %v1321_v47  ;;  %3661 = vrcp.f32 %v2641_v20  ;;  %v2671_v31 = vld [vmem:[%s4882_s3 + $0x8] sm:$0xff]  ;;  %v2287_v2 = vld [vmem:[#allocation5] sm:$0xff]  ;;  %v2299_v43 = vpop.permute.xlu1 %2298 }
 0x8ef   : > { %v3656_v23 = vpop.eup %3655  ;;  %1635 = vst.msk [vmem:[#allocation5 + $0x18] sm:$0xff] %vm688_vm3, %v1631_v40  ;;  %3453 = vmatpush3.msra.mxu1 %v2671_v31  ;;  %v2294_v62 = vpop.permute.xlu0 %2293 }
 0x8f0   : > { %1633 = vst.msk [vmem:[#allocation5 + $0x8] sm:$0xff] %vm688_vm3, %v1629_v22  ;;  %2648 = vperm.xlu0 %3616, %v3656_v23   ;;  %3462 = vmatprep.subr.mxu1 %v3974_v15  ;;  %v2311_v4 = vmul.f32 %v2294_v62, %v2287_v2 }
 0x8f2   : > { %v2289_v16 = vld [vmem:[#allocation5 + $0x10] sm:$0xff]  ;;  %v2309_v0 = vpop.permute.xlu1 %2308 }
 0x8f3   : > { %v3658_v59 = vpop.eup %3657  ;;  %v2304_v41 = vpop.permute.xlu0 %2303 }
 0x8f4   : > { %v3660_v61 = vpop.eup %3659  ;;  %2658 = vperm.xlu0 %3616, %v3658_v59   ;;  %v2313_v50 = vmul.f32 %v2304_v41, %v2289_v16 }
 0x8f5   : > { %2653 = vperm.xlu1 %3615, %v3660_v61  }
 0x8f6   : > { %v2290_v56 = vld [vmem:[#allocation5 + $0x18] sm:$0xff] }
 0x8f7   : > { %v2288_v44 = vld [vmem:[#allocation5 + $0x8] sm:$0xff]  ;;  %v2314_v3 = vmul.f32 %v2309_v0, %v2290_v56 }
 0x8f8   : > { %v3662_v37 = vpop.eup %3661  ;;  %v2312_v51 = vmul.f32 %v2299_v43, %v2288_v44 }
 0x8f9   : > { %2663 = vperm.xlu1 %3615, %v3662_v37  }
 0x91f   : > { %v2387_v42 = vpop.f32.mrb[18].mxu0 }
 0x920   : > { %v2619_v45 = vadd.f32 %v2387_v42, %v2311_v4  ;;  %v3431_v46 = vpop.f32.mrb[19].mxu0 }
 0x922   : > { %2623 = vst.msk [vmem:[#allocation5] sm:$0xff] %vm688_vm3, %v2619_v45 }
 0x923   : > { %v2539_v54 = vpop.f32.mrb[20].mxu0 }
 0x924   : > { %v2463_v55 = vpop.f32.mrb[24].mxu1  ;;  %v2621_v58 = vadd.f32 %v2539_v54, %v2313_v50  ;;  %v3441_v60 = vpop.f32.mrb[21].mxu0 }
 0x925   : > { %v2620_v53 = vadd.f32 %v2463_v55, %v2312_v51  ;;  %v3436_v63 = vpop.f32.mrb[25].mxu1 }
 0x926   : > { %2625 = vst.msk [vmem:[#allocation5 + $0x10] sm:$0xff] %vm688_vm3, %v2621_v58 }
 0x927   : > { %2624 = vst.msk [vmem:[#allocation5 + $0x8] sm:$0xff] %vm688_vm3, %v2620_v53 }
 0x928   : > { %v2615_v26 = vpop.f32.mrb[26].mxu1 }
 0x929   : > { %v2622_v27 = vadd.f32 %v2615_v26, %v2314_v3  ;;  %v3446_v28 = vpop.f32.mrb[27].mxu1  ;;  %v2634_v7 = vld [vmem:[#allocation5] sm:$0xff] }
 0x92b   : > { %2626 = vst.msk [vmem:[#allocation5 + $0x18] sm:$0xff] %vm688_vm3, %v2622_v27 }
 0x92d   : > { %v2636_v10 = vld [vmem:[#allocation5 + $0x10] sm:$0xff] }
 0x92e   : > { %v2635_v29 = vld [vmem:[#allocation5 + $0x8] sm:$0xff] }
 0x932   : > { %v2637_v48 = vld [vmem:[#allocation5 + $0x18] sm:$0xff] }
 0x96f   : > { %v2649_v8 = vpop.permute.xlu0 %2648 }
 0x970   : > { %v2666_v9 = vmul.f32 %v2649_v8, %v2634_v7 }
 0x972   : > { %3450 = vmatmul.mubr.msk.f32.vlgmr.msra.gmra.mrb[22].mxu0 %vm688_vm3, %v2666_v9 }
 0x973   : > { %v2659_v11 = vpop.permute.xlu0 %2658  ;;  %3458 = vmatpush3.msra.mxu0 %v2672_v12  ;;  %3459 = vmatprep.mubr.msk.f32.mxu0 %vm3973_vm2, %v3974_v15 }
 0x974   : > { %v2654_v19 = vpop.permute.xlu1 %2653  ;;  %v2668_v30 = vmul.f32 %v2659_v11, %v2636_v10 }
 0x975   : > { %v2667_v57 = vmul.f32 %v2654_v19, %v2635_v29 }
 0x976   : > { %3460 = vmatmul.mubr.msk.f32.vlgmr.msra.gmra.mrb[24].mxu0 %vm688_vm3, %v2668_v30 }
 0x977   : > { %3455 = vmatmul.mubr.msk.f32.vlgmr.msra.gmra.mrb[28].mxu1 %vm688_vm3, %v2667_v57 }
 0x978   : > { %v2664_v49 = vpop.permute.xlu1 %2663  ;;  %3463 = vmatpush3.msra.mxu1 %v2673_v32  ;;  %3464 = vmatprep.mubr.msk.f32.mxu1 %vm3973_vm2, %v3974_v15 }
 0x979   : > { %v2669_v5 = vmul.f32 %v2664_v49, %v2637_v48 }
 0x97b   : > { %3465 = vmatmul.mubr.msk.f32.vlgmr.msra.gmra.mrb[30].mxu1 %vm688_vm3, %v2669_v5 }
 0xa45   : > { %v2743_v21 = vpop.f32.mrb[22].mxu0 }
 0xa46   : > { %v3451_v1 = vpop.f32.mrb[23].mxu0  ;;  %v2966_v33 = vsel %vm560_vm0, %v2743_v21, 0.0 }
 0xa49   : > { %v2889_v34 = vpop.f32.mrb[24].mxu0 }
 0xa4a   : > { %v2816_v14 = vpop.f32.mrb[28].mxu1  ;;  %v3461_v25 = vpop.f32.mrb[25].mxu0  ;;  %v2969_v38 = vsel %vm560_vm0, %v2889_v34, 0.0 }
 0xa4b   : > { %v2967_v35 = vsel %vm560_vm0, %v2816_v14, 0.0  ;;  %v3456_v36 = vpop.f32.mrb[29].mxu1 }
 0xa4c   : > { %v2968_v24 = vadd.f32 %v2967_v35, %v2966_v33 }
 0xa4e   : > { %v2970_v15 = vadd.f32 %v2969_v38, %v2968_v24  ;;  %v2962_v39 = vpop.f32.mrb[30].mxu1 }
 0xa4f   : > { %v2971_v13 = vsel %vm560_vm0, %v2962_v39, 0.0  ;;  %v3466_v17 = vpop.f32.mrb[31].mxu1 }
 0xa50   : > { %v2972_v18 = vadd.f32 %v2971_v13, %v2970_v15 }
 0xa52   : > { %2973 = vst.msk [vmem:[%s546_s28] sm:$0xff] %vm560_vm0, %v2972_v18 }
 0xa53   : > { %3876 = shalt.err (!%p3873_p6)
}
 0xa54   : > { %s3877_s8 = scalar_lea.hbm %s4774_s12, 128  ;;  %s3881_s16 = scalar_lea.hbm %s4884_s29, 256 }
 0xa55   : > { %p3878_p5 = scmp.ne.s32.totalorder %s4774_s12, %s3877_s8  ;;  %p3882_p8 = scmp.lt.u32.totalorder %s4774_s12, %s4884_s29 }
 0xa56   : > { %p3883_p9 = scmp.lt.u32.totalorder %s3881_s16, %s3877_s8  ;;  %p3885_p3 = scmp.lt.u32.totalorder %s3877_s8, %s4774_s12 }
 0xa57   : > { %p3879_p7 = pnand %p3878_p5, %p4885_p10 }
 0xa58   : > { %p3884_p1 = por %p3883_p9, %p3882_p8 }
 0xa59   : > { %p3880_p0 = pneg %p3879_p7 }
 0xa5a   : > { %p3886_p13 = por %p3885_p3, %p3884_p1 }
 0xa5c   : > { %p3887_p2 = pnand %p3886_p13, %p3880_p0 }
 0xa5e   : > { %3890 = shalt.err (!%p3887_p2)
}
 0xa5f   : > { %3511 = dma.vmem_to_hbm [thread:$0]  (%p4885_p10), %s4776_s22, 128, %s4774_s12, %s2975_s7  }
 0xa60 PF: > { %s3001_s27 = sand.u32 1, %s3941_s13   ;;  %p4886_p11 = scmp.ne.s32.totalorder %s4865_s11, 0 }
 0xa61   : > { %p4887_p12 = scmp.ge.s32.totalorder %s3961_s18, 2  ;;  %s3002_s19 = scalar_lea.sflag [#allocation8], %s3001_s27 }
 0xa63   : > { %p3537_p4 = pnand %p4887_p12, %p4886_p11 }
 0xa65   : > { %3936 = dma.done.wait (!%p3537_p4), %s3002_s19, 128  }
 0xa66   : > { %3938 = vsyncadd (!%p3537_p4), %s3002_s19, 4294967168  ;;  %s31_s18 = sadd.s32 1, %s3961_s18   ;;  %s4888_s13 = smov %s3945_s14 }
 0xa67   : > { %p28_p6 = scmp.ge.s32.totalorder %s31_s18, 4   ;;  %s4889_s14 = smov %s3949_s15 }
 0xa68   : > { %s4890_s15 = smov %s4230_s9  ;;  %s4891_s16 = smov %s3957_s17 }
 0xa69   : > { %s4892_s17 = smov %s4894_s21  ;;  %30 = sbr.rel (!%p28_p6) target bundleno = 20 (0x14), region = 152 }
 0xa70   :  { %3007 = vsyncpa [#allocation7], 1 }
 0xa71   :  { %3009 = vsyncpa [#allocation7 + $0x1], 1 }
 0xa72   :  { %3010 = vsyncpa [#allocation10], 1 }
 0xa73   :  { %3012 = vsyncpa [#allocation10 + $0x1], 1 }
 0xa74   :  { %3013 = vsyncpa [#allocation13], 1 }
 0xa75   :  { %3014 = vsyncpa [#allocation16], 1 }
 0xa76   :  { %3015 = vsyncpa [#allocation8], 1 }
 0xa77   :  { %3017 = vsyncpa [#allocation8 + $0x1], 1 }

</bundles_post_ra>
